<compile_context>
chip_gen: v7x
topology: tpu7x:2x2x1
jax: 0.10.0
libtpu: 0.0.40
codegen_flags: <defaults>
</compile_context>

<pallas_src>
import functools

import jax
import jax.numpy as jnp
from jax.experimental import pallas as pl
from jax.experimental.pallas import tpu as pltpu


def _bhatta_kernel(z_ref, x_ref, w_ref, o_ref, *, k, out):
    # z_ref: (Nb, k, k, C)  x_ref: (Nb, m, m, C)  w_ref: (1, C)  o_ref: (Nb, out, out)
    x = jnp.maximum(x_ref[...].astype(jnp.float32), 0.0)       # (Nb, m, m, C)
    z = jnp.maximum(z_ref[...].astype(jnp.float32), 0.0)       # (Nb, k, k, C)
    w = w_ref[...].astype(jnp.float32)                          # (1, C)

    # EUP work done once per block; 1/k^2 and w folded into the template factor.
    sx = jnp.sqrt(x)                                             # (Nb, m, m, C)
    zw = jnp.sqrt(z) * (w * (1.0 / (k * k)))[:, None, None, :]  # (Nb, k, k, C)

    nb = x.shape[0]
    acc = jnp.zeros((nb, out, out), jnp.float32)                 # tiny, lives in vregs

    # j (width / sublane axis) outermost: one shifted copy of sx per j (k relayouts);
    # the inner i slice moves only the outer (height) axis -> pure address offset.
    # Statically unrolled: k is a small template size (k*k <= 16 typical).
    # For k*k >> 16 switch the i loop to lax.fori_loop(..., unroll=True) to avoid spills.
    for j in range(k):
        sxj = sx[:, :, j:j + out, :]                             # (Nb, m, out, C)
        for i in range(k):
            prod = sxj[:, i:i + out, :, :] * zw[:, i:i + 1, j:j + 1, :]
            acc = acc + jnp.sum(prod, axis=-1)                   # per-step lane reduce

    o_ref[...] = acc.astype(o_ref.dtype)


def bhattacharyya_coeff(z, x, weights):
    """z: (N, C, k, k), x: (N, C, m, m), weights: (1, C, 1, 1, 1) -> (N, 1, m-k+1, m-k+1)."""
    N, C, k, _ = z.shape
    m = x.shape[2]
    out = m - k + 1

    # Channel-last so C sits on the lane axis (lane-dense for the default C=256) and the
    # sliding-window slices never touch lanes. No channel padding: the block covers the
    # full C extent, so HBM DMA moves only real data even when C is small.
    # (If activations are already channel-last upstream, these transposes disappear.)
    x_cl = jnp.transpose(x, (0, 2, 3, 1))                        # (N, m, m, C)
    z_cl = jnp.transpose(z, (0, 2, 3, 1))                        # (N, k, k, C)
    w2d = weights.reshape(1, C)

    out_dtype = jnp.promote_types(jnp.promote_types(x.dtype, z.dtype), weights.dtype)

    # Generation-aware VMEM sizing (v5e/v6e: 128 MiB per TC, single TC; v7x: 64 MiB, 2 TCs).
    try:
        vmem_cap = int(pltpu.get_tpu_info().vmem_capacity_bytes)
    except Exception:
        vmem_cap = 128 * 1024 * 1024
    vmem_budget = vmem_cap // 3
    vmem_limit = min(int(vmem_cap * 0.6), vmem_cap - 8 * 1024 * 1024)
    multi_tc = vmem_cap < 100 * 1024 * 1024   # heuristic: v7x TCs have 64 MiB each

    # Per-batch-element VMEM bytes: double-buffered input blocks at the *input* dtype,
    # plus f32 temporaries (x/sx, zw, j-shifted sxj, pre-reduce product), plus the tiny
    # accumulator / double-buffered output block.
    in_bytes = x.dtype.itemsize
    per_n = (2 * (m * m + k * k) * C * in_bytes
             + (2 * m * m + k * k + m * out + out * out) * C * 4
             + 3 * out * out * 4)
    nb_cap = max(1, vmem_budget // max(per_n, 1))
    if multi_tc and N >= 2:
        # Keep >= 2 grid steps so both TensorCores get work.
        nb_cap = min(nb_cap, max(1, N // 2))

    divisors = [d for d in range(1, min(nb_cap, N) + 1) if N % d == 0]
    nb = divisors[-1] if divisors else 1
    if multi_tc:
        even_steps = [d for d in divisors if (N // d) % 2 == 0]
        if even_steps:
            nb = even_steps[-1]                                  # balanced work across 2 TCs
    grid = (N // nb,)

    grid_spec = pltpu.PrefetchScalarGridSpec(
        num_scalar_prefetch=0,
        grid=grid,
        in_specs=[
            pl.BlockSpec((nb, k, k, C), lambda n: (n, 0, 0, 0)),
            pl.BlockSpec((nb, m, m, C), lambda n: (n, 0, 0, 0)),
            pl.BlockSpec((1, C), lambda n: (0, 0)),
        ],
        out_specs=pl.BlockSpec((nb, out, out), lambda n: (n, 0, 0)),
    )

    res = pl.pallas_call(
        functools.partial(_bhatta_kernel, k=k, out=out),
        out_shape=jax.ShapeDtypeStruct((N, out, out), out_dtype),
        grid_spec=grid_spec,
        compiler_params=pltpu.CompilerParams(
            dimension_semantics=("parallel",),
            vmem_limit_bytes=vmem_limit,
        ),
    )(z_cl, x_cl, w2d)
    return res.reshape(N, 1, out, out)       # singleton-dim reshape: metadata only


def _reference(z, x, weights):
    """Pure-JAX reference mirroring the torch forward (unfold + sqrt + weighted sum + mean)."""
    N, C, k, _ = z.shape
    m = x.shape[2]
    out = m - k + 1
    patches = jnp.stack(
        [x[:, :, i:i + out, j:j + out] for i in range(k) for j in range(k)],
        axis=2)                                                  # (N, C, k*k, out, out)
    zf = z.reshape(N, C, k * k, 1, 1)
    w = weights.reshape(1, C, 1, 1, 1)
    coeff = jnp.sum(jnp.sqrt(patches * zf) * w, axis=1)          # (N, k*k, out, out)
    return coeff.mean(axis=1, keepdims=True)                     # (N, 1, out, out)


if __name__ == "__main__":
    key = jax.random.PRNGKey(0)
    N, C, k, m = 2, 8, 4, 8          # 4x4 template slid over 8x8 -> 5x5 response map
    kz, kx = jax.random.split(key)
    # Bhattacharyya coefficients operate on non-negative (probability-like) maps.
    z = jax.random.uniform(kz, (N, C, k, k), dtype=jnp.float32)
    x = jax.random.uniform(kx, (N, C, m, m), dtype=jnp.float32)
    # Parameter from __init__: nn.Parameter(torch.ones(1, input_dim, 1, 1, 1))
    weights = jnp.ones((1, C, 1, 1, 1), dtype=jnp.float32)

    result = bhattacharyya_coeff(z, x, weights)
    jax.block_until_ready(result)

    ref = _reference(z, x, weights)
    assert result.shape == (N, 1, m - k + 1, m - k + 1)
    assert jnp.allclose(result, ref, atol=1e-5, rtol=1e-5)
    print("KERNEL_OK")
</pallas_src>

<mosaic_0001>
module attributes {stable_mosaic.version = 11 : i64} {
  func.func @_bhatta_kernel(%arg0: i32, %arg1: memref<2x4x4x8xf32, #tpu.memory_space<vmem>>, %arg2: memref<2x8x8x8xf32, #tpu.memory_space<vmem>>, %arg3: memref<1x8xf32, #tpu.memory_space<vmem>>, %arg4: memref<2x5x5xf32, #tpu.memory_space<vmem>>) attributes {dimension_semantics = [#tpu.dimension_semantics<parallel>], iteration_bounds = array<i64: 1>, scalar_prefetch = 0 : i64, scratch_operands = 0 : i64, tpu.core_type = #tpu.core_type<tc>, window_params = [{transform_indices = @transform_0, window_bounds = array<i64: 2, 4, 4, 8>}, {transform_indices = @transform_1, window_bounds = array<i64: 2, 8, 8, 8>}, {pipeline_mode = #tpu.pipeline_mode<synchronous>, transform_indices = @transform_2, window_bounds = array<i64: 1, 8>}, {transform_indices = @transform_3, window_bounds = array<i64: 2, 5, 5>}]} {
    %c0 = arith.constant 0 : index
    %c0_0 = arith.constant 0 : index
    %c0_1 = arith.constant 0 : index
    %c0_2 = arith.constant 0 : index
    %0 = vector.load %arg2[%c0, %c0_0, %c0_1, %c0_2] : memref<2x8x8x8xf32, #tpu.memory_space<vmem>>, vector<2x8x8x8xf32>
    %cst = arith.constant 0.000000e+00 : f32
    %1 = vector.broadcast %cst : f32 to vector<2x8x8x8xf32>
    %2 = arith.maximumf %0, %1 : vector<2x8x8x8xf32>
    %c0_3 = arith.constant 0 : index
    %c0_4 = arith.constant 0 : index
    %c0_5 = arith.constant 0 : index
    %c0_6 = arith.constant 0 : index
    %3 = vector.load %arg1[%c0_3, %c0_4, %c0_5, %c0_6] : memref<2x4x4x8xf32, #tpu.memory_space<vmem>>, vector<2x4x4x8xf32>
    %cst_7 = arith.constant 0.000000e+00 : f32
    %4 = vector.broadcast %cst_7 : f32 to vector<2x4x4x8xf32>
    %5 = arith.maximumf %3, %4 : vector<2x4x4x8xf32>
    %c0_8 = arith.constant 0 : index
    %c0_9 = arith.constant 0 : index
    %6 = vector.load %arg3[%c0_8, %c0_9] : memref<1x8xf32, #tpu.memory_space<vmem>>, vector<1x8xf32>
    %7 = math.sqrt %2 : vector<2x8x8x8xf32>
    %8 = math.sqrt %5 : vector<2x4x4x8xf32>
    %cst_10 = arith.constant 6.250000e-02 : f32
    %9 = vector.broadcast %cst_10 : f32 to vector<1x8xf32>
    %10 = arith.mulf %6, %9 : vector<1x8xf32>
    %11 = vector.shape_cast %10 : vector<1x8xf32> to vector<1x1x1x8xf32>
    %12 = vector.broadcast %11 : vector<1x1x1x8xf32> to vector<2x4x4x8xf32>
    %13 = arith.mulf %8, %12 : vector<2x4x4x8xf32>
    %cst_11 = arith.constant 0.000000e+00 : f32
    %14 = vector.broadcast %cst_11 : f32 to vector<2x5x5xf32>
    %15 = vector.extract_strided_slice %7 {offsets = [0, 0, 0, 0], sizes = [2, 8, 5, 8], strides = [1, 1, 1, 1]} : vector<2x8x8x8xf32> to vector<2x8x5x8xf32>
    %16 = vector.extract_strided_slice %15 {offsets = [0, 0, 0, 0], sizes = [2, 5, 5, 8], strides = [1, 1, 1, 1]} : vector<2x8x5x8xf32> to vector<2x5x5x8xf32>
    %17 = vector.extract_strided_slice %13 {offsets = [0, 0, 0, 0], sizes = [2, 1, 1, 8], strides = [1, 1, 1, 1]} : vector<2x4x4x8xf32> to vector<2x1x1x8xf32>
    %18 = vector.broadcast %17 : vector<2x1x1x8xf32> to vector<2x5x5x8xf32>
    %19 = arith.mulf %16, %18 : vector<2x5x5x8xf32>
    %cst_12 = arith.constant dense<0.000000e+00> : vector<2x5x5xf32>
    %20 = vector.multi_reduction <add>, %19, %cst_12 [3] : vector<2x5x5x8xf32> to vector<2x5x5xf32>
    %21 = arith.addf %14, %20 : vector<2x5x5xf32>
    %22 = vector.extract_strided_slice %15 {offsets = [0, 1, 0, 0], sizes = [2, 5, 5, 8], strides = [1, 1, 1, 1]} : vector<2x8x5x8xf32> to vector<2x5x5x8xf32>
    %23 = vector.extract_strided_slice %13 {offsets = [0, 1, 0, 0], sizes = [2, 1, 1, 8], strides = [1, 1, 1, 1]} : vector<2x4x4x8xf32> to vector<2x1x1x8xf32>
    %24 = vector.broadcast %23 : vector<2x1x1x8xf32> to vector<2x5x5x8xf32>
    %25 = arith.mulf %22, %24 : vector<2x5x5x8xf32>
    %cst_13 = arith.constant dense<0.000000e+00> : vector<2x5x5xf32>
    %26 = vector.multi_reduction <add>, %25, %cst_13 [3] : vector<2x5x5x8xf32> to vector<2x5x5xf32>
    %27 = arith.addf %21, %26 : vector<2x5x5xf32>
    %28 = vector.extract_strided_slice %15 {offsets = [0, 2, 0, 0], sizes = [2, 5, 5, 8], strides = [1, 1, 1, 1]} : vector<2x8x5x8xf32> to vector<2x5x5x8xf32>
    %29 = vector.extract_strided_slice %13 {offsets = [0, 2, 0, 0], sizes = [2, 1, 1, 8], strides = [1, 1, 1, 1]} : vector<2x4x4x8xf32> to vector<2x1x1x8xf32>
    %30 = vector.broadcast %29 : vector<2x1x1x8xf32> to vector<2x5x5x8xf32>
    %31 = arith.mulf %28, %30 : vector<2x5x5x8xf32>
    %cst_14 = arith.constant dense<0.000000e+00> : vector<2x5x5xf32>
    %32 = vector.multi_reduction <add>, %31, %cst_14 [3] : vector<2x5x5x8xf32> to vector<2x5x5xf32>
    %33 = arith.addf %27, %32 : vector<2x5x5xf32>
    %34 = vector.extract_strided_slice %15 {offsets = [0, 3, 0, 0], sizes = [2, 5, 5, 8], strides = [1, 1, 1, 1]} : vector<2x8x5x8xf32> to vector<2x5x5x8xf32>
    %35 = vector.extract_strided_slice %13 {offsets = [0, 3, 0, 0], sizes = [2, 1, 1, 8], strides = [1, 1, 1, 1]} : vector<2x4x4x8xf32> to vector<2x1x1x8xf32>
    %36 = vector.broadcast %35 : vector<2x1x1x8xf32> to vector<2x5x5x8xf32>
    %37 = arith.mulf %34, %36 : vector<2x5x5x8xf32>
    %cst_15 = arith.constant dense<0.000000e+00> : vector<2x5x5xf32>
    %38 = vector.multi_reduction <add>, %37, %cst_15 [3] : vector<2x5x5x8xf32> to vector<2x5x5xf32>
    %39 = arith.addf %33, %38 : vector<2x5x5xf32>
    %40 = vector.extract_strided_slice %7 {offsets = [0, 0, 1, 0], sizes = [2, 8, 5, 8], strides = [1, 1, 1, 1]} : vector<2x8x8x8xf32> to vector<2x8x5x8xf32>
    %41 = vector.extract_strided_slice %40 {offsets = [0, 0, 0, 0], sizes = [2, 5, 5, 8], strides = [1, 1, 1, 1]} : vector<2x8x5x8xf32> to vector<2x5x5x8xf32>
    %42 = vector.extract_strided_slice %13 {offsets = [0, 0, 1, 0], sizes = [2, 1, 1, 8], strides = [1, 1, 1, 1]} : vector<2x4x4x8xf32> to vector<2x1x1x8xf32>
    %43 = vector.broadcast %42 : vector<2x1x1x8xf32> to vector<2x5x5x8xf32>
    %44 = arith.mulf %41, %43 : vector<2x5x5x8xf32>
    %cst_16 = arith.constant dense<0.000000e+00> : vector<2x5x5xf32>
    %45 = vector.multi_reduction <add>, %44, %cst_16 [3] : vector<2x5x5x8xf32> to vector<2x5x5xf32>
    %46 = arith.addf %39, %45 : vector<2x5x5xf32>
    %47 = vector.extract_strided_slice %40 {offsets = [0, 1, 0, 0], sizes = [2, 5, 5, 8], strides = [1, 1, 1, 1]} : vector<2x8x5x8xf32> to vector<2x5x5x8xf32>
    %48 = vector.extract_strided_slice %13 {offsets = [0, 1, 1, 0], sizes = [2, 1, 1, 8], strides = [1, 1, 1, 1]} : vector<2x4x4x8xf32> to vector<2x1x1x8xf32>
    %49 = vector.broadcast %48 : vector<2x1x1x8xf32> to vector<2x5x5x8xf32>
    %50 = arith.mulf %47, %49 : vector<2x5x5x8xf32>
    %cst_17 = arith.constant dense<0.000000e+00> : vector<2x5x5xf32>
    %51 = vector.multi_reduction <add>, %50, %cst_17 [3] : vector<2x5x5x8xf32> to vector<2x5x5xf32>
    %52 = arith.addf %46, %51 : vector<2x5x5xf32>
    %53 = vector.extract_strided_slice %40 {offsets = [0, 2, 0, 0], sizes = [2, 5, 5, 8], strides = [1, 1, 1, 1]} : vector<2x8x5x8xf32> to vector<2x5x5x8xf32>
    %54 = vector.extract_strided_slice %13 {offsets = [0, 2, 1, 0], sizes = [2, 1, 1, 8], strides = [1, 1, 1, 1]} : vector<2x4x4x8xf32> to vector<2x1x1x8xf32>
    %55 = vector.broadcast %54 : vector<2x1x1x8xf32> to vector<2x5x5x8xf32>
    %56 = arith.mulf %53, %55 : vector<2x5x5x8xf32>
    %cst_18 = arith.constant dense<0.000000e+00> : vector<2x5x5xf32>
    %57 = vector.multi_reduction <add>, %56, %cst_18 [3] : vector<2x5x5x8xf32> to vector<2x5x5xf32>
    %58 = arith.addf %52, %57 : vector<2x5x5xf32>
    %59 = vector.extract_strided_slice %40 {offsets = [0, 3, 0, 0], sizes = [2, 5, 5, 8], strides = [1, 1, 1, 1]} : vector<2x8x5x8xf32> to vector<2x5x5x8xf32>
    %60 = vector.extract_strided_slice %13 {offsets = [0, 3, 1, 0], sizes = [2, 1, 1, 8], strides = [1, 1, 1, 1]} : vector<2x4x4x8xf32> to vector<2x1x1x8xf32>
    %61 = vector.broadcast %60 : vector<2x1x1x8xf32> to vector<2x5x5x8xf32>
    %62 = arith.mulf %59, %61 : vector<2x5x5x8xf32>
    %cst_19 = arith.constant dense<0.000000e+00> : vector<2x5x5xf32>
    %63 = vector.multi_reduction <add>, %62, %cst_19 [3] : vector<2x5x5x8xf32> to vector<2x5x5xf32>
    %64 = arith.addf %58, %63 : vector<2x5x5xf32>
    %65 = vector.extract_strided_slice %7 {offsets = [0, 0, 2, 0], sizes = [2, 8, 5, 8], strides = [1, 1, 1, 1]} : vector<2x8x8x8xf32> to vector<2x8x5x8xf32>
    %66 = vector.extract_strided_slice %65 {offsets = [0, 0, 0, 0], sizes = [2, 5, 5, 8], strides = [1, 1, 1, 1]} : vector<2x8x5x8xf32> to vector<2x5x5x8xf32>
    %67 = vector.extract_strided_slice %13 {offsets = [0, 0, 2, 0], sizes = [2, 1, 1, 8], strides = [1, 1, 1, 1]} : vector<2x4x4x8xf32> to vector<2x1x1x8xf32>
    %68 = vector.broadcast %67 : vector<2x1x1x8xf32> to vector<2x5x5x8xf32>
    %69 = arith.mulf %66, %68 : vector<2x5x5x8xf32>
    %cst_20 = arith.constant dense<0.000000e+00> : vector<2x5x5xf32>
    %70 = vector.multi_reduction <add>, %69, %cst_20 [3] : vector<2x5x5x8xf32> to vector<2x5x5xf32>
    %71 = arith.addf %64, %70 : vector<2x5x5xf32>
    %72 = vector.extract_strided_slice %65 {offsets = [0, 1, 0, 0], sizes = [2, 5, 5, 8], strides = [1, 1, 1, 1]} : vector<2x8x5x8xf32> to vector<2x5x5x8xf32>
    %73 = vector.extract_strided_slice %13 {offsets = [0, 1, 2, 0], sizes = [2, 1, 1, 8], strides = [1, 1, 1, 1]} : vector<2x4x4x8xf32> to vector<2x1x1x8xf32>
    %74 = vector.broadcast %73 : vector<2x1x1x8xf32> to vector<2x5x5x8xf32>
    %75 = arith.mulf %72, %74 : vector<2x5x5x8xf32>
    %cst_21 = arith.constant dense<0.000000e+00> : vector<2x5x5xf32>
    %76 = vector.multi_reduction <add>, %75, %cst_21 [3] : vector<2x5x5x8xf32> to vector<2x5x5xf32>
    %77 = arith.addf %71, %76 : vector<2x5x5xf32>
    %78 = vector.extract_strided_slice %65 {offsets = [0, 2, 0, 0], sizes = [2, 5, 5, 8], strides = [1, 1, 1, 1]} : vector<2x8x5x8xf32> to vector<2x5x5x8xf32>
    %79 = vector.extract_strided_slice %13 {offsets = [0, 2, 2, 0], sizes = [2, 1, 1, 8], strides = [1, 1, 1, 1]} : vector<2x4x4x8xf32> to vector<2x1x1x8xf32>
    %80 = vector.broadcast %79 : vector<2x1x1x8xf32> to vector<2x5x5x8xf32>
    %81 = arith.mulf %78, %80 : vector<2x5x5x8xf32>
    %cst_22 = arith.constant dense<0.000000e+00> : vector<2x5x5xf32>
    %82 = vector.multi_reduction <add>, %81, %cst_22 [3] : vector<2x5x5x8xf32> to vector<2x5x5xf32>
    %83 = arith.addf %77, %82 : vector<2x5x5xf32>
    %84 = vector.extract_strided_slice %65 {offsets = [0, 3, 0, 0], sizes = [2, 5, 5, 8], strides = [1, 1, 1, 1]} : vector<2x8x5x8xf32> to vector<2x5x5x8xf32>
    %85 = vector.extract_strided_slice %13 {offsets = [0, 3, 2, 0], sizes = [2, 1, 1, 8], strides = [1, 1, 1, 1]} : vector<2x4x4x8xf32> to vector<2x1x1x8xf32>
    %86 = vector.broadcast %85 : vector<2x1x1x8xf32> to vector<2x5x5x8xf32>
    %87 = arith.mulf %84, %86 : vector<2x5x5x8xf32>
    %cst_23 = arith.constant dense<0.000000e+00> : vector<2x5x5xf32>
    %88 = vector.multi_reduction <add>, %87, %cst_23 [3] : vector<2x5x5x8xf32> to vector<2x5x5xf32>
    %89 = arith.addf %83, %88 : vector<2x5x5xf32>
    %90 = vector.extract_strided_slice %7 {offsets = [0, 0, 3, 0], sizes = [2, 8, 5, 8], strides = [1, 1, 1, 1]} : vector<2x8x8x8xf32> to vector<2x8x5x8xf32>
    %91 = vector.extract_strided_slice %90 {offsets = [0, 0, 0, 0], sizes = [2, 5, 5, 8], strides = [1, 1, 1, 1]} : vector<2x8x5x8xf32> to vector<2x5x5x8xf32>
    %92 = vector.extract_strided_slice %13 {offsets = [0, 0, 3, 0], sizes = [2, 1, 1, 8], strides = [1, 1, 1, 1]} : vector<2x4x4x8xf32> to vector<2x1x1x8xf32>
    %93 = vector.broadcast %92 : vector<2x1x1x8xf32> to vector<2x5x5x8xf32>
    %94 = arith.mulf %91, %93 : vector<2x5x5x8xf32>
    %cst_24 = arith.constant dense<0.000000e+00> : vector<2x5x5xf32>
    %95 = vector.multi_reduction <add>, %94, %cst_24 [3] : vector<2x5x5x8xf32> to vector<2x5x5xf32>
    %96 = arith.addf %89, %95 : vector<2x5x5xf32>
    %97 = vector.extract_strided_slice %90 {offsets = [0, 1, 0, 0], sizes = [2, 5, 5, 8], strides = [1, 1, 1, 1]} : vector<2x8x5x8xf32> to vector<2x5x5x8xf32>
    %98 = vector.extract_strided_slice %13 {offsets = [0, 1, 3, 0], sizes = [2, 1, 1, 8], strides = [1, 1, 1, 1]} : vector<2x4x4x8xf32> to vector<2x1x1x8xf32>
    %99 = vector.broadcast %98 : vector<2x1x1x8xf32> to vector<2x5x5x8xf32>
    %100 = arith.mulf %97, %99 : vector<2x5x5x8xf32>
    %cst_25 = arith.constant dense<0.000000e+00> : vector<2x5x5xf32>
    %101 = vector.multi_reduction <add>, %100, %cst_25 [3] : vector<2x5x5x8xf32> to vector<2x5x5xf32>
    %102 = arith.addf %96, %101 : vector<2x5x5xf32>
    %103 = vector.extract_strided_slice %90 {offsets = [0, 2, 0, 0], sizes = [2, 5, 5, 8], strides = [1, 1, 1, 1]} : vector<2x8x5x8xf32> to vector<2x5x5x8xf32>
    %104 = vector.extract_strided_slice %13 {offsets = [0, 2, 3, 0], sizes = [2, 1, 1, 8], strides = [1, 1, 1, 1]} : vector<2x4x4x8xf32> to vector<2x1x1x8xf32>
    %105 = vector.broadcast %104 : vector<2x1x1x8xf32> to vector<2x5x5x8xf32>
    %106 = arith.mulf %103, %105 : vector<2x5x5x8xf32>
    %cst_26 = arith.constant dense<0.000000e+00> : vector<2x5x5xf32>
    %107 = vector.multi_reduction <add>, %106, %cst_26 [3] : vector<2x5x5x8xf32> to vector<2x5x5xf32>
    %108 = arith.addf %102, %107 : vector<2x5x5xf32>
    %109 = vector.extract_strided_slice %90 {offsets = [0, 3, 0, 0], sizes = [2, 5, 5, 8], strides = [1, 1, 1, 1]} : vector<2x8x5x8xf32> to vector<2x5x5x8xf32>
    %110 = vector.extract_strided_slice %13 {offsets = [0, 3, 3, 0], sizes = [2, 1, 1, 8], strides = [1, 1, 1, 1]} : vector<2x4x4x8xf32> to vector<2x1x1x8xf32>
    %111 = vector.broadcast %110 : vector<2x1x1x8xf32> to vector<2x5x5x8xf32>
    %112 = arith.mulf %109, %111 : vector<2x5x5x8xf32>
    %cst_27 = arith.constant dense<0.000000e+00> : vector<2x5x5xf32>
    %113 = vector.multi_reduction <add>, %112, %cst_27 [3] : vector<2x5x5x8xf32> to vector<2x5x5xf32>
    %114 = arith.addf %108, %113 : vector<2x5x5xf32>
    %c0_28 = arith.constant 0 : index
    %c0_29 = arith.constant 0 : index
    %c0_30 = arith.constant 0 : index
    %115 = vector.load %arg4[%c0_28, %c0_29, %c0_30] : memref<2x5x5xf32, #tpu.memory_space<vmem>>, vector<2x5x5xf32>
    tpu.vector_store %arg4[%c0_28, %c0_29, %c0_30], %114 {strides = array<i32>} : memref<2x5x5xf32, #tpu.memory_space<vmem>>, vector<2x5x5xf32>,
    return
  }
  func.func @transform_0(%arg0: i32) -> (i32, i32, i32, i32) {
    %c0_i32 = arith.constant 0 : i32
    %c0_i32_0 = arith.constant 0 : i32
    %c0_i32_1 = arith.constant 0 : i32
    %c0_i32_2 = arith.constant 0 : i32
    return %arg0, %c0_i32, %c0_i32_0, %c0_i32_1 : i32, i32, i32, i32
  }
  func.func @transform_1(%arg0: i32) -> (i32, i32, i32, i32) {
    %c0_i32 = arith.constant 0 : i32
    %c0_i32_0 = arith.constant 0 : i32
    %c0_i32_1 = arith.constant 0 : i32
    %c0_i32_2 = arith.constant 0 : i32
    return %arg0, %c0_i32, %c0_i32_0, %c0_i32_1 : i32, i32, i32, i32
  }
  func.func @transform_2(%arg0: i32) -> (i32, i32) {
    %c0_i32 = arith.constant 0 : i32
    %c0_i32_0 = arith.constant 0 : i32
    %c0_i32_1 = arith.constant 0 : i32
    return %c0_i32, %c0_i32_0 : i32, i32
  }
  func.func @transform_3(%arg0: i32) -> (i32, i32, i32) {
    %c0_i32 = arith.constant 0 : i32
    %c0_i32_0 = arith.constant 0 : i32
    %c0_i32_1 = arith.constant 0 : i32
    return %arg0, %c0_i32, %c0_i32_0 : i32, i32, i32
  }
}

</mosaic_0001>

<bundles_post_ra>
// kernel: tpu_custom_call.1
= control target key start
LH: loop header
LB: loop body
LE: loop exit
PB: predicated region body
PF: predicated region fallthrough
CT: control target
= control target key end

     0   :  { %8 = vsyncpa [#allocation3], 0  ;;  %s2880_s0 = inlined_call_operand.hbm [shape: f32[2,4,4,8], index: 0, kind: input, shape index: {}]   ;;  %s2881_s1 = inlined_call_operand.hbm [shape: f32[2,8,8,8], index: 1, kind: input, shape index: {}]   ;;  %s2882_s2 = inlined_call_operand.hbm [shape: f32[1,8], index: 2, kind: input, shape index: {}]   ;;  %s2883_s3 = inlined_call_operand.hbm [shape: f32[2,5,5], index: 3, kind: output, shape index: {}]  }
   0x1   :  { %9 = vsyncpa [#allocation6], 0 }
   0x2   :  { %10 = vsyncpa [#allocation4], 0  ;;  %s1848_s12 = smov [#allocation5]   ;;  %s1754_s16 = scalar_lea.hbm %s2881_s1, 2048 }
   0x3   :  { %s28_s13 = sshll.u32 %s1848_s12, 4  ;;  %p1755_p0 = scmp.ne.s32.totalorder %s2881_s1, %s1754_s16  ;;  %s29_s13 = int_to_ptr.vmem [resolvable:$true] %s28_s13 }
   0x4   :  { %p1758_p1 = scmp.lt.u32.totalorder %s1754_s16, %s2881_s1 }
   0x6   :  { %p1760_p2 = pnand %p1758_p1, %p1755_p0 }
   0x8   :  { %1763 = shalt.err (!%p1760_p2)
}
   0x9   :  { %s1764_s21 = scalar_lea.vmem %s29_s13, 2048  ;;  %p1769_p4 = scmp.lt.s32.totalorder %s29_s13, %s29_s13 }
   0xa   :  { %p1765_p3 = scmp.ne.s32.totalorder %s29_s13, %s1764_s21  ;;  %p1770_p5 = scmp.lt.s32.totalorder %s1764_s21, %s1764_s21 }
   0xc   :  { %p1771_p6 = por %p1770_p5, %p1769_p4 }
   0xe   :  { %p1772_p7 = pnand %p1771_p6, %p1765_p3 }
  0x10   :  { %1775 = shalt.err (!%p1772_p7)
}
  0x11   :  { %s1849_s22 = smov 128   ;;  %s1850_s23 = smov 8  }
  0x12   :  { %34 = dma.hbm_to_vmem [thread:$0]  %s2881_s1, 2048, %s29_s13, [#allocation6], %s1849_s22, %s1849_s22, %s1850_s23  }
  0x13   :  { %s1851_s26 = smov [#allocation2]   ;;  %s1776_s30 = scalar_lea.hbm %s2880_s0, 512 }
  0x14   :  { %s16_s27 = sshll.u32 %s1851_s26, 4  ;;  %p1777_p8 = scmp.ne.s32.totalorder %s2880_s0, %s1776_s30  ;;  %s17_s27 = int_to_ptr.vmem [resolvable:$true] %s16_s27 }
  0x15   :  { %p1780_p9 = scmp.lt.u32.totalorder %s1776_s30, %s2880_s0 }
  0x17   :  { %p1782_p10 = pnand %p1780_p9, %p1777_p8 }
  0x19   :  { %1785 = shalt.err (!%p1782_p10)
}
  0x1a   :  { %s1786_s8 = scalar_lea.vmem %s17_s27, 512  ;;  %p1791_p12 = scmp.lt.s32.totalorder %s17_s27, %s17_s27 }
  0x1b   :  { %p1787_p11 = scmp.ne.s32.totalorder %s17_s27, %s1786_s8  ;;  %p1792_p13 = scmp.lt.s32.totalorder %s1786_s8, %s1786_s8 }
  0x1d   :  { %p1793_p0 = por %p1792_p13, %p1791_p12 }
  0x1f   :  { %p1794_p1 = pnand %p1793_p0, %p1787_p11 }
  0x21   :  { %1797 = shalt.err (!%p1794_p1)
}
  0x22   :  { %s1852_s1 = smov 64   ;;  %s1853_s9 = smov 4  }
  0x23   :  { %22 = dma.hbm_to_vmem [thread:$0]  %s2880_s0, 512, %s17_s27, [#allocation3], %s1852_s1, %s1852_s1, %s1853_s9  }
  0x24   :  { %s1854_s12 = smov [#allocation7]   ;;  %s1798_s16 = scalar_lea.hbm %s2882_s2, 16 }
  0x25   :  { %s41_s13 = sshll.u32 %s1854_s12, 4  ;;  %p1799_p2 = scmp.ne.s32.totalorder %s2882_s2, %s1798_s16  ;;  %s42_s13 = int_to_ptr.vmem [resolvable:$true] %s41_s13 }
  0x26   :  { %p1802_p3 = scmp.lt.u32.totalorder %s1798_s16, %s2882_s2 }
  0x28   :  { %p1804_p4 = pnand %p1802_p3, %p1799_p2 }
  0x2a   :  { %1807 = shalt.err (!%p1804_p4)
}
  0x2b   :  { %s1808_s21 = scalar_lea.vmem %s42_s13, 16  ;;  %s1812_s0 = scalar_lea.vmem %s42_s13, 32 }
  0x2c   :  { %p1809_p5 = scmp.ne.s32.totalorder %s42_s13, %s1808_s21  ;;  %p1813_p6 = scmp.lt.s32.totalorder %s42_s13, %s42_s13 }
  0x2d   :  { %p1814_p7 = scmp.lt.s32.totalorder %s1812_s0, %s1808_s21 }
  0x2f   :  { %p1815_p8 = por %p1814_p7, %p1813_p6 }
  0x31   :  { %p1816_p9 = pnand %p1815_p8, %p1809_p5 }
  0x33   :  { %1819 = shalt.err (!%p1816_p9)
}
  0x34   :  { %44 = dma.hbm_to_vmem [thread:$0]  %s2882_s2, 16, %s42_s13, [#allocation6]  }
  0x35   :  { %1842 = dma.done.wait [#allocation3], 512  }
  0x36   :  { %1843 = vsyncadd [#allocation3], 4294966784 }
  0x37   :  { %1844 = dma.done.wait [#allocation6], 2064  }
  0x38   :  { %1845 = vsyncadd [#allocation6], 4294965232  ;;  %v273_v0 = vlaneseq  ;;  %v56_v1 = vld [vmem:[#allocation5 + $0x10] sm:$0xff]  ;;  %v86_v2 = vld [vmem:[#allocation2] sm:$0xf]  ;;  %s1856_s2 = smov [#allocation8]  }
  0x39   :  { %v1916_v3 = vmax.f32 %v56_v1, 0.0  ;;  %v1918_v4 = vmax.f32 %v86_v2, 0.0  ;;  %v54_v6 = vld [vmem:[#allocation5] sm:$0xff]  ;;  %v57_v7 = vld [vmem:[#allocation5 + $0x18] sm:$0xff]  ;;  %v55_v8 = vld [vmem:[#allocation5 + $0x8] sm:$0xff]  ;;  %s1682_s26 = sshll.u32 %s1856_s2, 4  ;;  %s1683_s26 = int_to_ptr.vmem [resolvable:$true] %s1682_s26 }
  0x3a   :  { %v1921_v5 = vshrl.u32 %v273_v0, 7  ;;  %v102_v9 = vld [vmem:[#allocation7] sm:$0x1]  ;;  %v1923_v10 = vmax.f32 %v54_v6, 0.0  ;;  %v1925_v11 = vmax.f32 %v57_v7, 0.0  ;;  %v1928_v12 = vmax.f32 %v55_v8, 0.0  ;;  %p1825_p11 = scmp.lt.s32.totalorder %s1683_s26, %s1683_s26 }
  0x3b   :  { %1706 = vrsqrt.f32 %v1916_v3  ;;  %v271_v13 = vmul.f32 0.0625, %v102_v9  ;;  %v62_v15 = vld [vmem:[#allocation5 + $0x40] sm:$0xff]  ;;  %v90_v16 = vld [vmem:[#allocation2 + $0x10] sm:$0xf]  ;;  %vm119_vm0 = vcmp.eq.f32.partialorder %v1916_v3, inf  ;;  %v122_v19 = vand.u32 2147483648, %v1916_v3 }
  0x3c   :  { %1708 = vrsqrt.f32 %v1918_v4  ;;  %v1932_v14 = vsub.s32 0, %v1921_v5  ;;  %v58_v17 = vld [vmem:[#allocation5 + $0x20] sm:$0xff]  ;;  %v64_v18 = vld [vmem:[#allocation5 + $0x50] sm:$0xff]  ;;  %vm217_vm1 = vcmp.eq.f32.partialorder %v1918_v4, inf  ;;  %v63_v20 = vld [vmem:[#allocation5 + $0x48] sm:$0xff]  ;;  %vm121_vm2 = vcmp.eq.f32.partialorder %v1916_v3, 0.0 }
  0x3d   :  { %1710 = vrsqrt.f32 %v1923_v10  ;;  %vm219_vm3 = vcmp.eq.f32.partialorder %v1918_v4, 0.0  ;;  %v1942_v21 = vmax.f32 %v62_v15, 0.0  ;;  %v1944_v22 = vmax.f32 %v90_v16, 0.0  ;;  %v66_v24 = vld [vmem:[#allocation5 + $0x60] sm:$0xff]  ;;  %v65_v30 = vld [vmem:[#allocation5 + $0x58] sm:$0xff]  ;;  %s1820_s27 = scalar_lea.vmem %s1683_s26, 256 }
  0x3e   :  { %1712 = vrsqrt.f32 %v1925_v11  ;;  %v1946_v23 = vmax.f32 %v58_v17, 0.0  ;;  %v220_v25 = vand.u32 2147483648, %v1918_v4  ;;  %v1950_v26 = vrot.slane %v271_v13, %v1932_v14  ;;  %v87_v50 = vld [vmem:[#allocation2 + $0x4] sm:$0xf]  ;;  %v91_v9 = vld [vmem:[#allocation2 + $0x14] sm:$0xf]  ;;  %p1821_p10 = scmp.ne.s32.totalorder %s1683_s26, %s1820_s27  ;;  %p1826_p12 = scmp.lt.s32.totalorder %s1820_s27, %s1820_s27 }
  0x3f   :  { %1714 = vrsqrt.f32 %v1928_v12  ;;  %vm105_vm4 = vcmp.eq.f32.partialorder %v1923_v10, inf  ;;  %v1953_v27 = vmax.f32 %v64_v18, 0.0  ;;  %vm107_vm5 = vcmp.eq.f32.partialorder %v1923_v10, 0.0 }
  0x40   :  { %v108_v28 = vand.u32 2147483648, %v1923_v10  ;;  %1716 = vrsqrt.f32 %v1942_v21  ;;  %v1958_v29 = vmax.f32 %v63_v20, 0.0  ;;  %vm126_vm6 = vcmp.eq.f32.partialorder %v1925_v11, inf  ;;  %p1827_p13 = por %p1826_p12, %p1825_p11 }
  0x41   :  { %vm128_vm7 = vcmp.eq.f32.partialorder %v1925_v11, 0.0  ;;  %1718 = vrsqrt.f32 %v1944_v22  ;;  %v1963_v31 = vmax.f32 %v66_v24, 0.0  ;;  %v129_v32 = vand.u32 2147483648, %v1925_v11 }
  0x42   :  { %vm112_vm8 = vcmp.eq.f32.partialorder %v1928_v12, inf  ;;  %vm114_vm9 = vcmp.eq.f32.partialorder %v1928_v12, 0.0  ;;  %1720 = vrsqrt.f32 %v1946_v23  ;;  %v115_v34 = vand.u32 2147483648, %v1928_v12  ;;  %p1828_p0 = pnand %p1827_p13, %p1821_p10 }
  0x43   :  { %vm161_vm10 = vcmp.eq.f32.partialorder %v1942_v21, inf  ;;  %1722 = vrsqrt.f32 %v1953_v27  ;;  %v1972_v35 = vmax.f32 %v65_v30, 0.0  ;;  %v164_v38 = vand.u32 2147483648, %v1942_v21 }
  0x44   :  { %vm245_vm12 = vcmp.eq.f32.partialorder %v1944_v22, inf  ;;  %1724 = vrsqrt.f32 %v1958_v29  ;;  %vm247_vm14 = vcmp.eq.f32.partialorder %v1944_v22, 0.0  ;;  %v248_v41 = vand.u32 2147483648, %v1944_v22 }
  0x45   :  { %v1707_v33 = vpop.eup %1706  ;;  %1726 = vrsqrt.f32 %v1963_v31  ;;  %vm135_vm11 = vcmp.eq.f32.partialorder %v1946_v23, 0.0  ;;  %v136_v45 = vand.u32 2147483648, %v1946_v23  ;;  %vm175_vm13 = vcmp.eq.f32.partialorder %v1953_v27, inf }
  0x46   :  { %v1709_v36 = vpop.eup %1708  ;;  %v118_v37 = vmul.f32 %v1707_v33, %v1916_v3  ;;  %vm177_vm15 = vcmp.eq.f32.partialorder %v1953_v27, 0.0  ;;  %v178_v49 = vand.u32 2147483648, %v1953_v27  ;;  %1728 = vrsqrt.f32 %v1972_v35 }
  0x47   :  { %v1711_v39 = vpop.eup %1710  ;;  %v216_v40 = vmul.f32 %v1709_v36, %v1918_v4  ;;  %v171_v54 = vand.u32 2147483648, %v1958_v29  ;;  %v2032_v62 = vmax.f32 %v87_v50, 0.0  ;;  %v185_v8 = vand.u32 2147483648, %v1972_v35 }
  0x48   :  { %v1713_v42 = vpop.eup %1712  ;;  %v120_v43 = vsel %vm119_vm0, %v1916_v3, %v118_v37  ;;  %v104_v44 = vmul.f32 %v1711_v39, %v1923_v10  ;;  %vm168_vm0 = vcmp.eq.f32.partialorder %v1958_v29, inf }
  0x49   :  { %v1715_v46 = vpop.eup %1714  ;;  %v218_v47 = vsel %vm217_vm1, %v1918_v4, %v216_v40  ;;  %v125_v48 = vmul.f32 %v1713_v42, %v1925_v11  ;;  %v2010_v55 = vsel %vm121_vm2, %v122_v19, %v120_v43  ;;  %vm170_vm1 = vcmp.eq.f32.partialorder %v1958_v29, 0.0 }
  0x4a   :  { %v221_v51 = vsel %vm219_vm3, %v220_v25, %v218_v47  ;;  %v106_v52 = vsel %vm105_vm4, %v1923_v10, %v104_v44  ;;  %v111_v53 = vmul.f32 %v1715_v46, %v1928_v12  ;;  %vm189_vm3 = vcmp.eq.f32.partialorder %v1963_v31, inf  ;;  %v1717_v58 = vpop.eup %1716 }
  0x4b   :  { %v2013_v56 = vmul.f32 %v1950_v26, %v221_v51  ;;  %v127_v57 = vsel %vm126_vm6, %v1925_v11, %v125_v48  ;;  %v2022_v59 = vsel %vm107_vm5, %v108_v28, %v106_v52  ;;  %vm191_vm2 = vcmp.eq.f32.partialorder %v1963_v31, 0.0  ;;  %v1719_v63 = vpop.eup %1718 }
  0x4c   :  { %v2026_v60 = vsel %vm128_vm7, %v129_v32, %v127_v57  ;;  %v113_v61 = vsel %vm112_vm8, %v1928_v12, %v111_v53  ;;  %v160_v3 = vmul.f32 %v1717_v58, %v1942_v21  ;;  %v192_v4 = vand.u32 2147483648, %v1963_v31  ;;  %v1721_v6 = vpop.eup %1720  ;;  %v67_v53 = vld [vmem:[#allocation5 + $0x68] sm:$0xff] }
  0x4d   :  { %v289_v1 = vrot.slane %v2013_v56, %v1932_v14  ;;  %v2038_v2 = vsel %vm114_vm9, %v115_v34, %v113_v61  ;;  %v244_v7 = vmul.f32 %v1719_v63, %v1944_v22  ;;  %vm182_vm4 = vcmp.eq.f32.partialorder %v1972_v35, inf  ;;  %v1723_v10 = vpop.eup %1722  ;;  %v88_v58 = vld [vmem:[#allocation2 + $0x8] sm:$0xf]  ;;  %v92_v61 = vld [vmem:[#allocation2 + $0x18] sm:$0xf] }
  0x4e   :  { %1730 = vrsqrt.f32 %v2032_v62  ;;  %v1725_v16 = vpop.eup %1724  ;;  %v162_v17 = vsel %vm161_vm10, %v1942_v21, %v160_v3  ;;  %v132_v19 = vmul.f32 %v1721_v6, %v1946_v23  ;;  %v174_v20 = vmul.f32 %v1723_v10, %v1953_v27 }
  0x4f   :  { %v296_v11 = vmul.f32 %v289_v1, %v2010_v55  ;;  %v294_v12 = vmul.f32 %v289_v1, %v2022_v59  ;;  %v297_v13 = vmul.f32 %v289_v1, %v2026_v60  ;;  %v295_v15 = vmul.f32 %v289_v1, %v2038_v2  ;;  %v1727_v24 = vpop.eup %1726 }
  0x50   :  { %v246_v18 = vsel %vm245_vm12, %v1944_v22, %v244_v7  ;;  %vm2884_vm5 = vcmask 61440   ;;  %v2061_v32 = vmax.f32 %v91_v9, 0.0  ;;  %vm2888_vm9 = vcmp.eq.f32.partialorder %v1942_v21, 0.0  ;;  %v1729_v39 = vpop.eup %1728 }
  0x51   :  { %v311_v25 = vsel %vm2884_vm5, %v296_v11, 0.0  ;;  %vm2885_vm6 = vmmov %vm2884_vm5  ;;  %v2068_v34 = vsel %vm2888_vm9, %v164_v38, %v162_v17  ;;  %v249_v36 = vsel %vm247_vm14, %v248_v41, %v246_v18  ;;  %vm2889_vm10 = vcmp.eq.f32.partialorder %v1946_v23, inf }
  0x52   :  { %v305_v28 = vsel %vm2885_vm6, %v294_v12, 0.0  ;;  %vm2886_vm7 = vmmov %vm2884_vm5  ;;  %312 = vadd.xlane.f32.xlu1 %v311_v25  ;;  %v134_v37 = vsel %vm2889_vm10, %v1946_v23, %v132_v19  ;;  %v2078_v40 = vmul.f32 %v1950_v26, %v249_v36  ;;  %v176_v21 = vsel %vm175_vm13, %v1953_v27, %v174_v20  ;;  %v60_v12 = vld [vmem:[#allocation5 + $0x30] sm:$0xff]  ;;  %v89_v25 = vld [vmem:[#allocation2 + $0xc] sm:$0xf] }
  0x53   :  { %v314_v30 = vsel %vm2886_vm7, %v297_v13, 0.0  ;;  %306 = vadd.xlane.f32.xlu0 %v305_v28  ;;  %vm2887_vm8 = vmmov %vm2884_vm5  ;;  %v2082_v42 = vsel %vm135_vm11, %v136_v45, %v134_v37  ;;  %v167_v38 = vmul.f32 %v1725_v16, %v1958_v29  ;;  %v2091_v41 = vsel %vm177_vm15, %v178_v49, %v176_v21 }
  0x54   :  { %v308_v33 = vsel %vm2887_vm8, %v295_v15, 0.0  ;;  %v298_v22 = vmul.f32 %v289_v1, %v2082_v42  ;;  %v188_v43 = vmul.f32 %v1727_v24, %v1963_v31  ;;  %v181_v44 = vmul.f32 %v1729_v39, %v1972_v35  ;;  %vm2890_vm12 = vmmov %vm2884_vm5 }
  0x55   :  { %v293_v23 = vrot.slane %v2078_v40, %v1932_v14  ;;  %v169_v45 = vsel %vm168_vm0, %v1958_v29, %v167_v38  ;;  %vm184_vm11 = vcmp.eq.f32.partialorder %v1972_v35, 0.0  ;;  %1732 = vrsqrt.f32 %v2061_v32  ;;  %v59_v29 = vld [vmem:[#allocation5 + $0x28] sm:$0xff]  ;;  %vm2891_vm14 = vmmov %vm2884_vm5 }
  0x56   :  { %315 = vadd.xlane.f32.xlu1 %v314_v30  ;;  %v317_v27 = vsel %vm2890_vm12, %v298_v22, 0.0  ;;  %v2105_v46 = vsel %vm170_vm1, %v171_v54, %v169_v45  ;;  %v190_v47 = vsel %vm189_vm3, %v1963_v31, %v188_v43  ;;  %v183_v48 = vsel %vm182_vm4, %v1972_v35, %v181_v44  ;;  %vm2892_vm0 = vmmov %vm2884_vm5 }
  0x57   :  { %309 = vadd.xlane.f32.xlu0 %v308_v33  ;;  %v299_v49 = vmul.f32 %v293_v23, %v2068_v34  ;;  %v301_v50 = vmul.f32 %v293_v23, %v2091_v41  ;;  %v300_v51 = vmul.f32 %v293_v23, %v2105_v46  ;;  %v2118_v52 = vsel %vm191_vm2, %v192_v4, %v190_v47  ;;  %vm2893_vm1 = vmmov %vm2892_vm0  ;;  %v68_v33 = vld [vmem:[#allocation5 + $0x70] sm:$0xff] }
  0x58   :  { %v1731_v54 = vpop.eup %1730  ;;  %v2120_v57 = vsel %vm184_vm11, %v185_v8, %v183_v48  ;;  %vm224_vm13 = vcmp.eq.f32.partialorder %v2032_v62, inf  ;;  %v303_v63 = vmul.f32 %v293_v23, %v2118_v52  ;;  %vm226_vm15 = vcmp.eq.f32.partialorder %v2032_v62, 0.0  ;;  %vm2894_vm3 = vmmov %vm2892_vm0 }
  0x59   :  { %v320_v35 = vsel %vm2891_vm14, %v299_v49, 0.0  ;;  %v227_v1 = vand.u32 2147483648, %v2032_v62  ;;  %v326_v31 = vsel %vm2892_vm0, %v301_v50, 0.0  ;;  %v223_v3 = vmul.f32 %v1731_v54, %v2032_v62  ;;  %vm2895_vm2 = vmmov %vm2892_vm0 }
  0x5a   :  { %321 = vadd.xlane.f32.xlu1 %v320_v35  ;;  %v2129_v4 = vmax.f32 %v59_v29, 0.0  ;;  %v2131_v6 = vmax.f32 %v67_v53, 0.0  ;;  %v323_v7 = vsel %vm2893_vm1, %v300_v51, 0.0  ;;  %v302_v8 = vmul.f32 %v293_v23, %v2120_v57  ;;  %vm2896_vm7 = vmmov %vm2892_vm0 }
  0x5b   :  { %318 = vadd.xlane.f32.xlu0 %v317_v27  ;;  %v2135_v9 = vmax.f32 %v88_v58, 0.0  ;;  %v2137_v10 = vmax.f32 %v92_v61, 0.0  ;;  %v225_v11 = vsel %vm224_vm13, %v2032_v62, %v223_v3  ;;  %v332_v17 = vsel %vm2894_vm3, %v303_v63, 0.0  ;;  %vm2897_vm8 = vmmov %vm2892_vm0  ;;  %v93_v63 = vld [vmem:[#allocation2 + $0x1c] sm:$0xf] }
  0x5c   :  { %1734 = vrsqrt.f32 %v2129_v4  ;;  %v228_v13 = vsel %vm226_vm15, %v227_v1, %v225_v11  ;;  %v329_v18 = vsel %vm2895_vm2, %v302_v8, 0.0  ;;  %v2151_v62 = vmax.f32 %v60_v12, 0.0  ;;  %vm2898_vm13 = vmmov %vm2892_vm0 }
  0x5d   :  { %1736 = vrsqrt.f32 %v2131_v6  ;;  %v2145_v15 = vmul.f32 %v1950_v26, %v228_v13  ;;  %vm252_vm4 = vcmp.eq.f32.partialorder %v2061_v32, inf  ;;  %v255_v24 = vand.u32 2147483648, %v2061_v32  ;;  %vm2899_vm14 = vmmov %vm2892_vm0 }
  0x5e   :  { %327 = vadd.xlane.f32.xlu1 %v326_v31  ;;  %1738 = vrsqrt.f32 %v2135_v9  ;;  %vm254_vm5 = vcmp.eq.f32.partialorder %v2061_v32, 0.0  ;;  %vm140_vm6 = vcmp.eq.f32.partialorder %v2129_v4, inf  ;;  %v2168_v43 = vmax.f32 %v89_v25, 0.0  ;;  %vm2900_vm3 = vmmov %vm2895_vm2 }
  0x5f   :  { %324 = vadd.xlane.f32.xlu0 %v323_v7  ;;  %v1733_v16 = vpop.eup %1732  ;;  %1740 = vrsqrt.f32 %v2137_v10  ;;  %v348_v19 = vrot.slane %v2145_v15, %v1932_v14  ;;  %vm142_vm9 = vcmp.eq.f32.partialorder %v2129_v4, 0.0  ;;  %v143_v23 = vand.u32 2147483648, %v2129_v4 }
  0x60   :  { %v251_v20 = vmul.f32 %v1733_v16, %v2061_v32  ;;  %1742 = vrsqrt.f32 %v2151_v62  ;;  %v2175_v45 = vmax.f32 %v68_v33, 0.0  ;;  %vm196_vm10 = vcmp.eq.f32.partialorder %v2131_v6, inf }
  0x61   :  { %v354_v28 = vmul.f32 %v348_v19, %v2010_v55  ;;  %v353_v30 = vmul.f32 %v348_v19, %v2038_v2  ;;  %v356_v36 = vmul.f32 %v348_v19, %v2082_v42  ;;  %v355_v37 = vmul.f32 %v348_v19, %v2026_v60 }
  0x62   :  { %333 = vadd.xlane.f32.xlu1 %v332_v17  ;;  %v253_v39 = vsel %vm252_vm4, %v2061_v32, %v251_v20  ;;  %vm198_vm11 = vcmp.eq.f32.partialorder %v2131_v6, 0.0  ;;  %v199_v32 = vand.u32 2147483648, %v2131_v6  ;;  %vm231_vm12 = vcmp.eq.f32.partialorder %v2135_v9, inf  ;;  %vm2901_vm4 = vmmov %vm2895_vm2 }
  0x63   :  { %330 = vadd.xlane.f32.xlu0 %v329_v18  ;;  %v366_v21 = vsel %vm2896_vm7, %v354_v28, 0.0  ;;  %v363_v38 = vsel %vm2897_vm8, %v353_v30, 0.0  ;;  %v256_v22 = vsel %vm254_vm5, %v255_v24, %v253_v39  ;;  %v372_v48 = vsel %vm2898_vm13, %v356_v36, 0.0  ;;  %vm2902_vm5 = vmmov %vm2895_vm2 }
  0x64   :  { %v2171_v44 = vmul.f32 %v1950_v26, %v256_v22  ;;  %v369_v49 = vsel %vm2899_vm14, %v355_v37, 0.0  ;;  %vm233_vm15 = vcmp.eq.f32.partialorder %v2135_v9, 0.0  ;;  %v234_v54 = vand.u32 2147483648, %v2135_v9  ;;  %vm2903_vm7 = vmmov %vm2895_vm2 }
  0x65   :  { %1744 = vrsqrt.f32 %v2168_v43  ;;  %vm259_vm0 = vcmp.eq.f32.partialorder %v2137_v10, inf  ;;  %vm261_vm1 = vcmp.eq.f32.partialorder %v2137_v10, 0.0  ;;  %v262_v12 = vand.u32 2147483648, %v2137_v10  ;;  %vm2904_vm8 = vmmov %vm2895_vm2 }
  0x66   :  { %v1735_v27 = vpop.eup %1734  ;;  %367 = vadd.xlane.f32.xlu1 %v366_v21  ;;  %v352_v50 = vrot.slane %v2171_v44, %v1932_v14  ;;  %1746 = vrsqrt.f32 %v2175_v45  ;;  %v2215_v17 = vmax.f32 %v93_v63, 0.0  ;;  %v61_v21 = vld [vmem:[#allocation5 + $0x38] sm:$0xff]  ;;  %vm2906_vm13 = vmmov %vm2895_vm2  ;;  %v241_v63 = vand.u32 2147483648, %v2168_v43 }
  0x67   :  { %364 = vadd.xlane.f32.xlu0 %v363_v38  ;;  %v1737_v47 = vpop.eup %1736  ;;  %v139_v51 = vmul.f32 %v1735_v27, %v2129_v4  ;;  %vm240_vm14 = vcmp.eq.f32.partialorder %v2168_v43, 0.0 }
  0x68   :  { %v1739_v29 = vpop.eup %1738  ;;  %v195_v53 = vmul.f32 %v1737_v47, %v2131_v6  ;;  %v358_v61 = vmul.f32 %v352_v50, %v2105_v46  ;;  %v360_v31 = vmul.f32 %v352_v50, %v2120_v57  ;;  %v359_v11 = vmul.f32 %v352_v50, %v2091_v41 }
  0x69   :  { %v1741_v58 = vpop.eup %1740  ;;  %v141_v35 = vsel %vm140_vm6, %v2129_v4, %v139_v51  ;;  %v230_v13 = vmul.f32 %v1739_v29, %v2135_v9  ;;  %v361_v24 = vmul.f32 %v352_v50, %v2118_v52  ;;  %1748 = vrsqrt.f32 %v2215_v17 }
  0x6a   :  { %373 = vadd.xlane.f32.xlu1 %v372_v48  ;;  %v2198_v1 = vsel %vm142_vm9, %v143_v23, %v141_v35  ;;  %v197_v3 = vsel %vm196_vm10, %v2131_v6, %v195_v53  ;;  %v378_v7 = vsel %vm2900_vm3, %v358_v61, 0.0  ;;  %v258_v16 = vmul.f32 %v1741_v58, %v2137_v10  ;;  %v1743_v18 = vpop.eup %1742 }
  0x6b   :  { %370 = vadd.xlane.f32.xlu0 %v369_v49  ;;  %v357_v8 = vmul.f32 %v348_v19, %v2198_v1  ;;  %v2211_v4 = vsel %vm198_vm11, %v199_v32, %v197_v3  ;;  %v384_v19 = vsel %vm2901_vm4, %v360_v31, 0.0  ;;  %v232_v6 = vsel %vm231_vm12, %v2135_v9, %v230_v13  ;;  %vm2905_vm12 = vmmov %vm2895_vm2  ;;  %v69_v3 = vld [vmem:[#allocation5 + $0x78] sm:$0xff] }
  0x6c   :  { %v260_v25 = vsel %vm259_vm0, %v2137_v10, %v258_v16  ;;  %v381_v28 = vsel %vm2902_vm5, %v359_v11, 0.0  ;;  %v362_v30 = vmul.f32 %v352_v50, %v2211_v4  ;;  %v235_v33 = vsel %vm233_vm15, %v234_v54, %v232_v6  ;;  %vm2907_vm0 = vmmov %vm2895_vm2 }
  0x6d   :  { %v375_v20 = vsel %vm2895_vm2, %v357_v8, 0.0  ;;  %v263_v36 = vsel %vm261_vm1, %v262_v12, %v260_v25  ;;  %v2233_v37 = vmul.f32 %v1950_v26, %v235_v33  ;;  %v146_v39 = vmul.f32 %v1743_v18, %v2151_v62  ;;  %vm2908_vm1 = vmmov %vm2907_vm0 }
  0x6e   :  { %379 = vadd.xlane.f32.xlu1 %v378_v7  ;;  %v2240_v9 = vmul.f32 %v1950_v26, %v263_v36  ;;  %vm147_vm6 = vcmp.eq.f32.partialorder %v2151_v62, inf  ;;  %v390_v23 = vsel %vm2903_vm7, %v362_v30, 0.0  ;;  %v387_v27 = vsel %vm2904_vm8, %v361_v24, 0.0  ;;  %vm2909_vm2 = vmmov %vm2907_vm0 }
  0x6f   :  { %376 = vadd.xlane.f32.xlu0 %v375_v20  ;;  %v1745_v38 = vpop.eup %1744  ;;  %v406_v22 = vrot.slane %v2233_v37, %v1932_v14  ;;  %v150_v48 = vand.u32 2147483648, %v2151_v62  ;;  %v2248_v49 = vmax.f32 %v61_v21, 0.0  ;;  %v148_v50 = vsel %vm147_vm6, %v2151_v62, %v146_v39  ;;  %vm2910_vm4 = vmmov %vm2907_vm0 }
  0x70   :  { %v1747_v10 = vpop.eup %1746  ;;  %vm149_vm9 = vcmp.eq.f32.partialorder %v2151_v62, 0.0  ;;  %v237_v51 = vmul.f32 %v1745_v38, %v2168_v43  ;;  %v410_v29 = vrot.slane %v2240_v9, %v1932_v14  ;;  %vm203_vm10 = vcmp.eq.f32.partialorder %v2175_v45, inf  ;;  %vm2911_vm6 = vmmov %vm2907_vm0 }
  0x71   :  { %v412_v32 = vmul.f32 %v406_v22, %v2026_v60  ;;  %v411_v47 = vmul.f32 %v406_v22, %v2010_v55  ;;  %v202_v53 = vmul.f32 %v1747_v10, %v2175_v45  ;;  %vm238_vm11 = vcmp.eq.f32.partialorder %v2168_v43, inf  ;;  %vm2912_vm7 = vmmov %vm2907_vm0 }
  0x72   :  { %385 = vadd.xlane.f32.xlu1 %v384_v19  ;;  %v414_v61 = vmul.f32 %v406_v22, %v2198_v1  ;;  %v413_v62 = vmul.f32 %v406_v22, %v2082_v42  ;;  %v2262_v35 = vsel %vm149_vm9, %v150_v48, %v148_v50  ;;  %1750 = vrsqrt.f32 %v2248_v49  ;;  %vm2913_vm8 = vmmov %vm2907_vm0 }
  0x73   :  { %382 = vadd.xlane.f32.xlu0 %v381_v28  ;;  %v424_v54 = vsel %vm2905_vm12, %v412_v32, 0.0  ;;  %v421_v58 = vsel %vm2906_vm13, %v411_v47, 0.0  ;;  %v239_v31 = vsel %vm238_vm11, %v2168_v43, %v237_v51  ;;  %v1749_v7 = vpop.eup %1748  ;;  %v204_v8 = vsel %vm203_vm10, %v2175_v45, %v202_v53  ;;  %vm2914_vm10 = vmmov %vm2907_vm0 }
  0x74   :  { %vm205_vm15 = vcmp.eq.f32.partialorder %v2175_v45, 0.0  ;;  %v206_v11 = vand.u32 2147483648, %v2175_v45  ;;  %v430_v12 = vsel %vm2907_vm0, %v414_v61, 0.0  ;;  %v427_v13 = vsel %vm2908_vm1, %v413_v62, 0.0  ;;  %vm2915_vm12 = vmmov %vm2907_vm0 }
  0x75   :  { %v416_v16 = vmul.f32 %v410_v29, %v2091_v41  ;;  %v415_v18 = vmul.f32 %v406_v22, %v2262_v35  ;;  %v242_v20 = vsel %vm240_vm14, %v241_v63, %v239_v31  ;;  %v2275_v43 = vmax.f32 %v69_v3, 0.0  ;;  %vm2916_vm13 = vmmov %vm2907_vm0 }
  0x76   :  { %391 = vadd.xlane.f32.xlu1 %v390_v23  ;;  %v265_v19 = vmul.f32 %v1749_v7, %v2215_v17  ;;  %v418_v24 = vmul.f32 %v410_v29, %v2118_v52  ;;  %v2279_v6 = vsel %vm205_vm15, %v206_v11, %v204_v8  ;;  %vm266_vm3 = vcmp.eq.f32.partialorder %v2215_v17, inf  ;;  %vm2917_vm15 = vmmov %vm2907_vm0 }
  0x77   :  { %388 = vadd.xlane.f32.xlu0 %v387_v27  ;;  %v436_v45 = vsel %vm2909_vm2, %v416_v16, 0.0  ;;  %v433_v25 = vsel %vm2910_vm4, %v415_v18, 0.0  ;;  %v417_v28 = vmul.f32 %v410_v29, %v2120_v57  ;;  %v2286_v30 = vmul.f32 %v1950_v26, %v242_v20  ;;  %vm2919_vm2 = vmmov %vm2907_vm0 }
  0x78   :  { %v269_v33 = vand.u32 2147483648, %v2215_v17  ;;  %1752 = vrsqrt.f32 %v2275_v43  ;;  %v267_v36 = vsel %vm266_vm3, %v2215_v17, %v265_v19  ;;  %vm268_vm5 = vcmp.eq.f32.partialorder %v2215_v17, 0.0  ;;  %vm2918_vm3 = vmmov %vm2907_vm0 }
  0x79   :  { %v420_v21 = vmul.f32 %v410_v29, %v2279_v6  ;;  %v442_v38 = vsel %vm2911_vm6, %v418_v24, 0.0  ;;  %v439_v22 = vsel %vm2912_vm7, %v417_v28, 0.0  ;;  %v419_v10 = vmul.f32 %v410_v29, %v2211_v4  ;;  %vm2921_vm6 = vmmov %vm2907_vm0 }
  0x7a   :  { %425 = vadd.xlane.f32.xlu1 %v424_v54  ;;  %v464_v23 = vrot.slane %v2286_v30, %v1932_v14  ;;  %v270_v27 = vsel %vm268_vm5, %v269_v33, %v267_v36  ;;  %vm154_vm9 = vcmp.eq.f32.partialorder %v2248_v49, inf  ;;  %v157_v29 = vand.u32 2147483648, %v2248_v49  ;;  %vm2920_vm5 = vmmov %vm2907_vm0 }
  0x7b   :  { %422 = vadd.xlane.f32.xlu0 %v421_v58  ;;  %v448_v17 = vsel %vm2913_vm8, %v420_v21, 0.0  ;;  %v445_v47 = vsel %vm2914_vm10, %v419_v10, 0.0  ;;  %v2305_v51 = vmul.f32 %v1950_v26, %v270_v27  ;;  %vm156_vm11 = vcmp.eq.f32.partialorder %v2248_v49, 0.0  ;;  %vm2922_vm7 = vmmov %vm2907_vm0 }
  0x7c   :  { %v1751_v39 = vpop.eup %1750  ;;  %v470_v48 = vmul.f32 %v464_v23, %v2082_v42  ;;  %v469_v50 = vmul.f32 %v464_v23, %v2026_v60  ;;  %v472_v58 = vmul.f32 %v464_v23, %v2262_v35  ;;  %v471_v63 = vmul.f32 %v464_v23, %v2198_v1  ;;  %vm2923_vm8 = vmmov %vm2907_vm0 }
  0x7d   :  { %v153_v32 = vmul.f32 %v1751_v39, %v2248_v49  ;;  %v468_v26 = vrot.slane %v2305_v51, %v1932_v14  ;;  %vm210_vm14 = vcmp.eq.f32.partialorder %v2275_v43, inf  ;;  %v213_v14 = vand.u32 2147483648, %v2275_v43 }
  0x7e   :  { %431 = vadd.xlane.f32.xlu1 %v430_v12  ;;  %v482_v61 = vsel %vm2915_vm12, %v470_v48, 0.0  ;;  %v479_v62 = vsel %vm2916_vm13, %v469_v50, 0.0  ;;  %v488_v7 = vsel %vm2917_vm15, %v472_v58, 0.0  ;;  %v485_v8 = vsel %vm2907_vm0, %v471_v63, 0.0 }
  0x7f   :  { %428 = vadd.xlane.f32.xlu0 %v427_v13  ;;  %v155_v53 = vsel %vm154_vm9, %v2248_v49, %v153_v32  ;;  %v2321_v49 = vsub.s32 1, %v1921_v5  ;;  %v474_v11 = vmul.f32 %v468_v26, %v2120_v57  ;;  %vm212_vm1 = vcmp.eq.f32.partialorder %v2275_v43, 0.0 }
  0x80   :  { %v2316_v31 = vsel %vm156_vm11, %v157_v29, %v155_v53  ;;  %v476_v18 = vmul.f32 %v468_v26, %v2211_v4  ;;  %v475_v24 = vmul.f32 %v468_v26, %v2118_v52  ;;  %v477_v28 = vmul.f32 %v468_v26, %v2279_v6 }
  0x81   :  { %v473_v12 = vmul.f32 %v464_v23, %v2316_v31  ;;  %v791_v13 = vrot.slane %v2305_v51, %v2321_v49  ;;  %v494_v20 = vsel %vm2918_vm3, %v474_v11, 0.0  ;;  %v522_v33 = vrot.slane %v2013_v56, %v2321_v49 }
  0x82   :  { %437 = vadd.xlane.f32.xlu1 %v436_v45  ;;  %v1753_v54 = vpop.eup %1752  ;;  %vm537_vm4 = vcmask 62465   ;;  %v503_v50 = vsel %vm2923_vm8, %v477_v28, 0.0  ;;  %vm890_vm9 = vcmask 63490   ;;  %vm1243_vm10 = vcmask 64515  }
  0x83   :  { %434 = vadd.xlane.f32.xlu0 %v433_v25  ;;  %v209_v3 = vmul.f32 %v1753_v54, %v2275_v43  ;;  %v491_v19 = vsel %vm2919_vm2, %v473_v12, 0.0  ;;  %v797_v25 = vmul.f32 %v791_v13, %v2120_v57  ;;  %v799_v39 = vmul.f32 %v791_v13, %v2211_v4 }
  0x84   :  { %v798_v21 = vmul.f32 %v791_v13, %v2118_v52  ;;  %v800_v23 = vmul.f32 %v791_v13, %v2279_v6  ;;  %v528_v29 = vmul.f32 %v522_v33, %v2038_v2  ;;  %v527_v53 = vmul.f32 %v522_v33, %v2022_v59 }
  0x85   :  { %v211_v16 = vsel %vm210_vm14, %v2275_v43, %v209_v3  ;;  %v500_v43 = vsel %vm2920_vm5, %v476_v18, 0.0  ;;  %v2344_v36 = vsel %vm537_vm4, %v797_v25, 0.0  ;;  %v2353_v27 = vsel %vm537_vm4, %v799_v39, 0.0 }
  0x86   :  { %443 = vadd.xlane.f32.xlu1 %v442_v38  ;;  %v2336_v45 = vsel %vm212_vm1, %v213_v14, %v211_v16  ;;  %v497_v38 = vsel %vm2921_vm6, %v475_v24, 0.0  ;;  %v2356_v32 = vsel %vm537_vm4, %v798_v21, 0.0  ;;  %v526_v54 = vrot.slane %v2078_v40, %v2321_v49 }
  0x87   :  { %440 = vadd.xlane.f32.xlu0 %v439_v22  ;;  %v478_v22 = vmul.f32 %v468_v26, %v2336_v45  ;;  %v801_v10 = vmul.f32 %v791_v13, %v2336_v45  ;;  %v541_v58 = vsel %vm537_vm4, %v528_v29, 0.0  ;;  %v529_v63 = vmul.f32 %v522_v33, %v2010_v55 }
  0x88   :  { %v534_v14 = vmul.f32 %v526_v54, %v2091_v41  ;;  %v533_v13 = vmul.f32 %v526_v54, %v2105_v46  ;;  %v536_v16 = vmul.f32 %v526_v54, %v2118_v52  ;;  %v535_v18 = vmul.f32 %v526_v54, %v2120_v57 }
  0x89   :  { %v506_v48 = vsel %vm2922_vm7, %v478_v22, 0.0  ;;  %v544_v3 = vsel %vm537_vm4, %v529_v63, 0.0  ;;  %v611_v24 = vrot.slane %v2145_v15, %v2321_v49  ;;  %v2389_v25 = vsub.s32 2, %v1921_v5 }
  0x8a   :  { %449 = vadd.xlane.f32.xlu1 %v448_v17  ;;  %v2359_v17 = vsel %vm537_vm4, %v801_v10, 0.0  ;;  %vm1660_vm11 = vcmask 1041409   ;;  %vm1662_vm12 = vcmask 1042434   ;;  %vm1664_vm13 = vcmask 1043459  }
  0x8b   :  { %446 = vadd.xlane.f32.xlu0 %v445_v47  ;;  %v2362_v47 = vsel %vm537_vm4, %v800_v23, 0.0  ;;  %v1144_v28 = vrot.slane %v2305_v51, %v2389_v25  ;;  %v617_v39 = vmul.f32 %v611_v24, %v2010_v55  ;;  %v616_v21 = vmul.f32 %v611_v24, %v2038_v2 }
  0x8c   :  { %vm1666_vm14 = vcmask 1044484   ;;  %vm1674_vm15 = vcmask 36864  }
  0x8d   :  { %v1150_v22 = vmul.f32 %v1144_v28, %v2120_v57  ;;  %v629_v29 = vsel %vm537_vm4, %v617_v39, 0.0 }
  0x8e   :  { %483 = vadd.xlane.f32.xlu1 %v482_v61  ;;  %v538_v61 = vsel %vm537_vm4, %v527_v53, 0.0  ;;  %v626_v53 = vsel %vm537_vm4, %v616_v21, 0.0 }
  0x8f   :  { %480 = vadd.xlane.f32.xlu0 %v479_v62  ;;  %v530_v62 = vmul.f32 %v522_v33, %v2026_v60  ;;  %v2403_v23 = vsel %vm890_vm9, %v1150_v22, 0.0 }
  0x91   :  { %v547_v26 = vsel %vm537_vm4, %v530_v62, 0.0 }
  0x92   :  { %489 = vadd.xlane.f32.xlu1 %v488_v7  ;;  %v532_v7 = vmul.f32 %v526_v54, %v2068_v34  ;;  %v618_v54 = vmul.f32 %v611_v24, %v2026_v60 }
  0x93   :  { %486 = vadd.xlane.f32.xlu0 %v485_v8  ;;  %v531_v8 = vmul.f32 %v522_v33, %v2082_v42  ;;  %v565_v33 = vsel %vm537_vm4, %v536_v16, 0.0 }
  0x94   :  { %v553_v11 = vsel %vm537_vm4, %v532_v7, 0.0  ;;  %v1153_v7 = vmul.f32 %v1144_v28, %v2279_v6 }
  0x95   :  { %v550_v12 = vsel %vm537_vm4, %v531_v8, 0.0 }
  0x96   :  { %495 = vadd.xlane.f32.xlu1 %v494_v20  ;;  %v559_v20 = vsel %vm537_vm4, %v534_v14, 0.0  ;;  %v2421_v8 = vsel %vm890_vm9, %v1153_v7, 0.0 }
  0x97   :  { %492 = vadd.xlane.f32.xlu0 %v491_v19  ;;  %v556_v19 = vsel %vm537_vm4, %v533_v13, 0.0 }
  0x9a   :  { %501 = vadd.xlane.f32.xlu1 %v500_v43  ;;  %v562_v43 = vsel %vm537_vm4, %v535_v18, 0.0 }
  0x9b   :  { %498 = vadd.xlane.f32.xlu0 %v497_v38  ;;  %v1151_v38 = vmul.f32 %v1144_v28, %v2118_v52 }
  0x9d   :  { %v2400_v10 = vsel %vm890_vm9, %v1151_v38, 0.0  ;;  %v1154_v38 = vmul.f32 %v1144_v28, %v2336_v45 }
  0x9e   :  { %507 = vadd.xlane.f32.xlu1 %v506_v48  ;;  %v619_v48 = vmul.f32 %v611_v24, %v2082_v42 }
  0x9f   :  { %504 = vadd.xlane.f32.xlu0 %v503_v50  ;;  %v615_v50 = vrot.slane %v2171_v44, %v2321_v49  ;;  %v2439_v22 = vsel %vm890_vm9, %v1154_v38, 0.0 }
  0xa0   :  { %v635_v63 = vsel %vm537_vm4, %v619_v48, 0.0  ;;  %v703_v48 = vrot.slane %v2240_v9, %v2321_v49 }
  0xa1   :  { %v621_v62 = vmul.f32 %v615_v50, %v2105_v46  ;;  %v623_v14 = vmul.f32 %v615_v50, %v2120_v57  ;;  %v622_v13 = vmul.f32 %v615_v50, %v2091_v41  ;;  %v625_v16 = vmul.f32 %v615_v50, %v2211_v4 }
  0xa2   :  { %542 = vadd.xlane.f32.xlu1 %v541_v58  ;;  %v1152_v58 = vmul.f32 %v1144_v28, %v2211_v4  ;;  %v711_v7 = vmul.f32 %v703_v48, %v2118_v52 }
  0xa3   :  { %539 = vadd.xlane.f32.xlu0 %v538_v61  ;;  %v647_v18 = vsel %vm537_vm4, %v623_v14, 0.0 }
  0xa4   :  { %v2413_v61 = vsel %vm890_vm9, %v1152_v58, 0.0  ;;  %v735_v14 = vsel %vm537_vm4, %v711_v7, 0.0 }
  0xa6   :  { %548 = vadd.xlane.f32.xlu1 %v547_v26  ;;  %v632_v26 = vsel %vm537_vm4, %v618_v54, 0.0 }
  0xa7   :  { %545 = vadd.xlane.f32.xlu0 %v544_v3  ;;  %v620_v3 = vmul.f32 %v611_v24, %v2198_v1  ;;  %v699_v24 = vrot.slane %v2233_v37, %v2321_v49 }
  0xa9   :  { %v705_v39 = vmul.f32 %v699_v24, %v2026_v60  ;;  %v704_v21 = vmul.f32 %v699_v24, %v2010_v55  ;;  %v706_v54 = vmul.f32 %v699_v24, %v2082_v42 }
  0xaa   :  { %554 = vadd.xlane.f32.xlu1 %v553_v11  ;;  %v641_v11 = vsel %vm537_vm4, %v621_v62, 0.0  ;;  %v709_v62 = vmul.f32 %v703_v48, %v2091_v41 }
  0xab   :  { %551 = vadd.xlane.f32.xlu0 %v550_v12  ;;  %v638_v12 = vsel %vm537_vm4, %v620_v3, 0.0  ;;  %v720_v58 = vsel %vm537_vm4, %v706_v54, 0.0 }
  0xae   :  { %560 = vadd.xlane.f32.xlu1 %v559_v20  ;;  %v644_v20 = vsel %vm537_vm4, %v622_v13, 0.0 }
  0xaf   :  { %557 = vadd.xlane.f32.xlu0 %v556_v19  ;;  %v624_v19 = vmul.f32 %v615_v50, %v2118_v52  ;;  %v717_v50 = vsel %vm537_vm4, %v705_v39, 0.0 }
  0xb2   :  { %566 = vadd.xlane.f32.xlu1 %v565_v33  ;;  %v653_v33 = vsel %vm537_vm4, %v625_v16, 0.0  ;;  %v713_v16 = vmul.f32 %v703_v48, %v2279_v6 }
  0xb3   :  { %563 = vadd.xlane.f32.xlu0 %v562_v43  ;;  %v650_v43 = vsel %vm537_vm4, %v624_v19, 0.0 }
  0xb6   :  { %630 = vadd.xlane.f32.xlu1 %v629_v29  ;;  %v714_v29 = vsel %vm537_vm4, %v704_v21, 0.0 }
  0xb7   :  { %627 = vadd.xlane.f32.xlu0 %v626_v53  ;;  %v707_v53 = vmul.f32 %v699_v24, %v2198_v1 }
  0xb9   :  { %v723_v28 = vsel %vm537_vm4, %v707_v53, 0.0 }
  0xba   :  { %636 = vadd.xlane.f32.xlu1 %v635_v63  ;;  %v708_v63 = vmul.f32 %v699_v24, %v2262_v35 }
  0xbb   :  { %633 = vadd.xlane.f32.xlu0 %v632_v26  ;;  %v729_v26 = vsel %vm537_vm4, %v709_v62, 0.0 }
  0xbc   :  { %v726_v3 = vsel %vm537_vm4, %v708_v63, 0.0 }
  0xbe   :  { %642 = vadd.xlane.f32.xlu1 %v641_v11  ;;  %v710_v11 = vmul.f32 %v703_v48, %v2120_v57 }
  0xbf   :  { %639 = vadd.xlane.f32.xlu0 %v638_v12  ;;  %v787_v12 = vrot.slane %v2286_v30, %v2321_v49 }
  0xc0   :  { %v732_v13 = vsel %vm537_vm4, %v710_v11, 0.0 }
  0xc1   :  { %v793_v24 = vmul.f32 %v787_v12, %v2082_v42  ;;  %v795_v39 = vmul.f32 %v787_v12, %v2262_v35  ;;  %v794_v21 = vmul.f32 %v787_v12, %v2198_v1  ;;  %v796_v53 = vmul.f32 %v787_v12, %v2316_v31 }
  0xc2   :  { %648 = vadd.xlane.f32.xlu1 %v647_v18  ;;  %v712_v18 = vmul.f32 %v703_v48, %v2211_v4 }
  0xc3   :  { %645 = vadd.xlane.f32.xlu0 %v644_v20  ;;  %v741_v20 = vsel %vm537_vm4, %v713_v16, 0.0  ;;  %v805_v49 = vsel %vm537_vm4, %v793_v24, 0.0 }
  0xc4   :  { %v738_v19 = vsel %vm537_vm4, %v712_v18, 0.0 }
  0xc6   :  { %654 = vadd.xlane.f32.xlu1 %v653_v33  ;;  %v792_v33 = vmul.f32 %v787_v12, %v2026_v60 }
  0xc7   :  { %651 = vadd.xlane.f32.xlu0 %v650_v43 }
  0xc8   :  { %v802_v43 = vsel %vm537_vm4, %v792_v33, 0.0 }
  0xca   :  { %718 = vadd.xlane.f32.xlu1 %v717_v50  ;;  %v811_v50 = vsel %vm537_vm4, %v795_v39, 0.0 }
  0xcb   :  { %715 = vadd.xlane.f32.xlu0 %v714_v29  ;;  %v808_v29 = vsel %vm537_vm4, %v794_v21, 0.0 }
  0xce   :  { %724 = vadd.xlane.f32.xlu1 %v723_v28 }
  0xcf   :  { %721 = vadd.xlane.f32.xlu0 %v720_v58  ;;  %v814_v58 = vsel %vm537_vm4, %v796_v53, 0.0 }
  0xd2   :  { %730 = vadd.xlane.f32.xlu1 %v729_v26  ;;  %v875_v26 = vrot.slane %v2013_v56, %v2389_v25 }
  0xd3   :  { %727 = vadd.xlane.f32.xlu0 %v726_v3 }
  0xd4   :  { %v881_v11 = vmul.f32 %v875_v26, %v2038_v2  ;;  %v880_v12 = vmul.f32 %v875_v26, %v2022_v59  ;;  %v882_v18 = vmul.f32 %v875_v26, %v2010_v55  ;;  %v884_v33 = vmul.f32 %v875_v26, %v2082_v42 }
  0xd6   :  { %736 = vadd.xlane.f32.xlu1 %v735_v14  ;;  %v894_v16 = vsel %vm890_vm9, %v881_v11, 0.0 }
  0xd7   :  { %733 = vadd.xlane.f32.xlu0 %v732_v13 }
  0xda   :  { %742 = vadd.xlane.f32.xlu1 %v741_v20 }
  0xdb   :  { %739 = vadd.xlane.f32.xlu0 %v738_v19 }
  0xde   :  { %806 = vadd.xlane.f32.xlu1 %v805_v49 }
  0xdf   :  { %803 = vadd.xlane.f32.xlu0 %v802_v43  ;;  %v313_v38 = vpop.xlane.xlu1 %312 }
  0xe0   :  { %v307_v48 = vpop.xlane.xlu0 %306 }
  0xe2   :  { %812 = vadd.xlane.f32.xlu1 %v811_v50 }
  0xe3   :  { %809 = vadd.xlane.f32.xlu0 %v808_v29  ;;  %v316_v54 = vpop.xlane.xlu1 %315  ;;  %v903_v29 = vsel %vm890_vm9, %v884_v33, 0.0 }
  0xe4   :  { %v310_v28 = vpop.xlane.xlu0 %309 }
  0xe6   :  { %818 = vadd.xlane.f32.xlu1 %v2344_v36  ;;  %v879_v36 = vrot.slane %v2078_v40, %v2389_v25 }
  0xe7   :  { %815 = vadd.xlane.f32.xlu0 %v814_v58  ;;  %v322_v62 = vpop.xlane.xlu1 %321 }
  0xe8   :  { %v319_v63 = vpop.xlane.xlu0 %318  ;;  %v885_v24 = vmul.f32 %v879_v36, %v2068_v34  ;;  %v887_v53 = vmul.f32 %v879_v36, %v2091_v41  ;;  %v886_v58 = vmul.f32 %v879_v36, %v2105_v46 }
  0xea   :  { %824 = vadd.xlane.f32.xlu1 %v2353_v27  ;;  %v891_v27 = vsel %vm890_vm9, %v880_v12, 0.0  ;;  %v906_v50 = vsel %vm890_vm9, %v885_v24, 0.0 }
  0xeb   :  { %821 = vadd.xlane.f32.xlu0 %v2356_v32  ;;  %v328_v3 = vpop.xlane.xlu1 %327  ;;  %v883_v32 = vmul.f32 %v875_v26, %v2026_v60 }
  0xec   :  { %v325_v7 = vpop.xlane.xlu0 %324 }
  0xee   :  { %830 = vadd.xlane.f32.xlu1 %v2359_v17  ;;  %v900_v17 = vsel %vm890_vm9, %v883_v32, 0.0  ;;  %v889_v32 = vmul.f32 %v879_v36, %v2118_v52 }
  0xef   :  { %827 = vadd.xlane.f32.xlu0 %v2362_v47  ;;  %v334_v14 = vpop.xlane.xlu1 %333  ;;  %v897_v47 = vsel %vm890_vm9, %v882_v18, 0.0  ;;  %v888_v18 = vmul.f32 %v879_v36, %v2120_v57 }
  0xf0   :  { %v331_v13 = vpop.xlane.xlu0 %330 }
  0xf2   :  { %895 = vadd.xlane.f32.xlu1 %v894_v16  ;;  %v912_v16 = vsel %vm890_vm9, %v887_v53, 0.0 }
  0xf3   :  { %892 = vadd.xlane.f32.xlu0 %v891_v27  ;;  %v368_v20 = vpop.xlane.xlu1 %367  ;;  %v909_v27 = vsel %vm890_vm9, %v886_v58, 0.0 }
  0xf4   :  { %v365_v19 = vpop.xlane.xlu0 %364  ;;  %v394_v49 = vadd.f32 %v368_v20, %v310_v28  ;;  %v964_v28 = vrot.slane %v2145_v15, %v2389_v25 }
  0xf5   :  { %v393_v43 = vadd.f32 %v365_v19, %v307_v48 }
  0xf6   :  { %901 = vadd.xlane.f32.xlu1 %v900_v17  ;;  %v918_v17 = vsel %vm890_vm9, %v889_v32, 0.0  ;;  %v970_v24 = vmul.f32 %v964_v28, %v2010_v55  ;;  %v969_v33 = vmul.f32 %v964_v28, %v2038_v2  ;;  %v972_v53 = vmul.f32 %v964_v28, %v2082_v42 }
  0xf7   :  { %898 = vadd.xlane.f32.xlu0 %v897_v47  ;;  %v374_v39 = vpop.xlane.xlu1 %373  ;;  %v915_v47 = vsel %vm890_vm9, %v888_v18, 0.0  ;;  %v971_v58 = vmul.f32 %v964_v28, %v2026_v60  ;;  %v973_v18 = vmul.f32 %v964_v28, %v2198_v1 }
  0xf8   :  { %v371_v21 = vpop.xlane.xlu0 %370  ;;  %v396_v11 = vadd.f32 %v374_v39, %v316_v54 }
  0xf9   :  { %v395_v12 = vadd.f32 %v371_v21, %v313_v38 }
  0xfa   :  { %907 = vadd.xlane.f32.xlu1 %v906_v50  ;;  %v982_v50 = vsel %vm890_vm9, %v970_v24, 0.0 }
  0xfb   :  { %904 = vadd.xlane.f32.xlu0 %v903_v29  ;;  %v380_v48 = vpop.xlane.xlu1 %379  ;;  %v979_v29 = vsel %vm890_vm9, %v969_v33, 0.0 }
  0xfc   :  { %v377_v26 = vpop.xlane.xlu0 %376  ;;  %v398_v20 = vadd.f32 %v380_v48, %v322_v62  ;;  %v968_v62 = vrot.slane %v2171_v44, %v2389_v25 }
  0xfd   :  { %v397_v19 = vadd.f32 %v377_v26, %v319_v63 }
  0xfe   :  { %913 = vadd.xlane.f32.xlu1 %v912_v16  ;;  %v988_v16 = vsel %vm890_vm9, %v972_v53, 0.0  ;;  %v974_v32 = vmul.f32 %v968_v62, %v2105_v46  ;;  %v976_v24 = vmul.f32 %v968_v62, %v2120_v57  ;;  %v975_v33 = vmul.f32 %v968_v62, %v2091_v41 }
  0xff   :  { %910 = vadd.xlane.f32.xlu0 %v909_v27  ;;  %v386_v38 = vpop.xlane.xlu1 %385  ;;  %v985_v27 = vsel %vm890_vm9, %v971_v58, 0.0  ;;  %v978_v28 = vmul.f32 %v968_v62, %v2211_v4  ;;  %v977_v53 = vmul.f32 %v968_v62, %v2118_v52  ;;  %v1052_v58 = vrot.slane %v2233_v37, %v2389_v25 }
 0x100   :  { %v383_v54 = vpop.xlane.xlu0 %382  ;;  %v400_v39 = vadd.f32 %v386_v38, %v328_v3 }
 0x101   :  { %v399_v21 = vadd.f32 %v383_v54, %v325_v7 }
 0x102   :  { %919 = vadd.xlane.f32.xlu1 %v918_v17 }
 0x103   :  { %916 = vadd.xlane.f32.xlu0 %v915_v47  ;;  %v392_v63 = vpop.xlane.xlu1 %391 }
 0x104   :  { %v389_v36 = vpop.xlane.xlu0 %388  ;;  %v402_v48 = vadd.f32 %v392_v63, %v334_v14  ;;  %v994_v14 = vsel %vm890_vm9, %v974_v32, 0.0  ;;  %v1058_v32 = vmul.f32 %v1052_v58, %v2026_v60 }
 0x105   :  { %v401_v26 = vadd.f32 %v389_v36, %v331_v13  ;;  %v991_v13 = vsel %vm890_vm9, %v973_v18, 0.0  ;;  %v1057_v18 = vmul.f32 %v1052_v58, %v2010_v55 }
 0x106   :  { %983 = vadd.xlane.f32.xlu1 %v982_v50  ;;  %v1000_v50 = vsel %vm890_vm9, %v976_v24, 0.0  ;;  %v1060_v24 = vmul.f32 %v1052_v58, %v2198_v1 }
 0x107   :  { %980 = vadd.xlane.f32.xlu0 %v979_v29  ;;  %v426_v3 = vpop.xlane.xlu1 %425  ;;  %v997_v29 = vsel %vm890_vm9, %v975_v33, 0.0  ;;  %v1059_v33 = vmul.f32 %v1052_v58, %v2082_v42 }
 0x108   :  { %v423_v7 = vpop.xlane.xlu0 %422  ;;  %v452_v38 = vadd.f32 %v426_v3, %v394_v49 }
 0x109   :  { %v451_v54 = vadd.f32 %v423_v7, %v393_v43 }
 0x10a   :  { %989 = vadd.xlane.f32.xlu1 %v988_v16  ;;  %v1006_v16 = vsel %vm890_vm9, %v978_v28, 0.0 }
 0x10b   :  { %986 = vadd.xlane.f32.xlu0 %v985_v27  ;;  %v432_v17 = vpop.xlane.xlu1 %431  ;;  %v1003_v27 = vsel %vm890_vm9, %v977_v53, 0.0  ;;  %v1061_v53 = vmul.f32 %v1052_v58, %v2262_v35 }
 0x10c   :  { %v429_v47 = vpop.xlane.xlu0 %428  ;;  %v454_v63 = vadd.f32 %v432_v17, %v396_v11 }
 0x10d   :  { %v453_v36 = vadd.f32 %v429_v47, %v395_v12 }
 0x10e   :  { %995 = vadd.xlane.f32.xlu1 %v994_v14  ;;  %v1070_v14 = vsel %vm890_vm9, %v1058_v32, 0.0  ;;  %v1079_v32 = vsel %vm890_vm9, %v1061_v53, 0.0 }
 0x10f   :  { %992 = vadd.xlane.f32.xlu0 %v991_v13  ;;  %v438_v49 = vpop.xlane.xlu1 %437  ;;  %v1067_v13 = vsel %vm890_vm9, %v1057_v18, 0.0 }
 0x110   :  { %v435_v43 = vpop.xlane.xlu0 %434  ;;  %v456_v3 = vadd.f32 %v438_v49, %v398_v20  ;;  %v1056_v20 = vrot.slane %v2240_v9, %v2389_v25 }
 0x111   :  { %v455_v7 = vadd.f32 %v435_v43, %v397_v19  ;;  %v1076_v43 = vsel %vm890_vm9, %v1060_v24, 0.0 }
 0x112   :  { %1001 = vadd.xlane.f32.xlu1 %v1000_v50  ;;  %v1073_v50 = vsel %vm890_vm9, %v1059_v33, 0.0  ;;  %v1063_v18 = vmul.f32 %v1056_v20, %v2120_v57  ;;  %v1065_v24 = vmul.f32 %v1056_v20, %v2211_v4  ;;  %v2550_v33 = vrot.slane %v2286_v30, %v2389_v25 }
 0x113   :  { %998 = vadd.xlane.f32.xlu0 %v997_v29  ;;  %v444_v11 = vpop.xlane.xlu1 %443  ;;  %v1062_v29 = vmul.f32 %v1056_v20, %v2091_v41 }
 0x114   :  { %v441_v12 = vpop.xlane.xlu0 %440  ;;  %v458_v17 = vadd.f32 %v444_v11, %v400_v39 }
 0x115   :  { %v457_v47 = vadd.f32 %v441_v12, %v399_v21 }
 0x116   :  { %1007 = vadd.xlane.f32.xlu1 %v1006_v16  ;;  %v1064_v16 = vmul.f32 %v1056_v20, %v2118_v52 }
 0x117   :  { %1004 = vadd.xlane.f32.xlu0 %v1003_v27  ;;  %v450_v19 = vpop.xlane.xlu1 %449  ;;  %v1082_v27 = vsel %vm890_vm9, %v1062_v29, 0.0  ;;  %v1146_v29 = vmul.f32 %v2550_v33, %v2082_v42 }
 0x118   :  { %v447_v62 = vpop.xlane.xlu0 %446  ;;  %v460_v28 = vadd.f32 %v450_v19, %v402_v48  ;;  %v1088_v58 = vsel %vm890_vm9, %v1064_v16, 0.0 }
 0x119   :  { %v459_v49 = vadd.f32 %v447_v62, %v401_v26 }
 0x11a   :  { %1071 = vadd.xlane.f32.xlu1 %v1070_v14  ;;  %v1085_v14 = vsel %vm890_vm9, %v1063_v18, 0.0 }
 0x11b   :  { %1068 = vadd.xlane.f32.xlu0 %v1067_v13  ;;  %v484_v39 = vpop.xlane.xlu1 %483  ;;  %v1066_v13 = vmul.f32 %v1056_v20, %v2279_v6  ;;  %v1145_v20 = vmul.f32 %v2550_v33, %v2026_v60 }
 0x11c   :  { %v481_v21 = vpop.xlane.xlu0 %480  ;;  %v510_v11 = vadd.f32 %v484_v39, %v452_v38 }
 0x11d   :  { %v509_v12 = vadd.f32 %v481_v21, %v451_v54 }
 0x11e   :  { %1077 = vadd.xlane.f32.xlu1 %v1076_v43  ;;  %v1094_v43 = vsel %vm890_vm9, %v1066_v13, 0.0 }
 0x11f   :  { %1074 = vadd.xlane.f32.xlu0 %v1073_v50  ;;  %v490_v48 = vpop.xlane.xlu1 %489  ;;  %v1091_v50 = vsel %vm890_vm9, %v1065_v24, 0.0  ;;  %v1148_v24 = vmul.f32 %v2550_v33, %v2262_v35 }
 0x120   :  { %v487_v26 = vpop.xlane.xlu0 %486  ;;  %v512_v19 = vadd.f32 %v490_v48, %v454_v63  ;;  %v1155_v48 = vsel %vm890_vm9, %v1145_v20, 0.0 }
 0x121   :  { %v511_v62 = vadd.f32 %v487_v26, %v453_v36 }
 0x122   :  { %1083 = vadd.xlane.f32.xlu1 %v1082_v27 }
 0x123   :  { %1080 = vadd.xlane.f32.xlu0 %v1079_v32  ;;  %v496_v38 = vpop.xlane.xlu1 %495 }
 0x124   :  { %v493_v54 = vpop.xlane.xlu0 %492  ;;  %v514_v39 = vadd.f32 %v496_v38, %v456_v3 }
 0x125   :  { %v513_v21 = vadd.f32 %v493_v54, %v455_v7  ;;  %v1158_v7 = vsel %vm890_vm9, %v1146_v29, 0.0 }
 0x126   :  { %1089 = vadd.xlane.f32.xlu1 %v1088_v58  ;;  %v1147_v58 = vmul.f32 %v2550_v33, %v2198_v1 }
 0x127   :  { %1086 = vadd.xlane.f32.xlu0 %v1085_v14  ;;  %v502_v63 = vpop.xlane.xlu1 %501 }
 0x128   :  { %v499_v36 = vpop.xlane.xlu0 %498  ;;  %v516_v53 = vadd.f32 %v502_v63, %v458_v17  ;;  %v2563_v17 = vsub.s32 3, %v1921_v5  ;;  %v1161_v13 = vsel %vm890_vm9, %v1147_v58, 0.0 }
 0x129   :  { %v515_v16 = vadd.f32 %v499_v36, %v457_v47 }
 0x12a   :  { %1095 = vadd.xlane.f32.xlu1 %v1094_v43  ;;  %v2572_v63 = vrot.slane %v2013_v56, %v2563_v17  ;;  %v2582_v56 = vrot.slane %v2078_v40, %v2563_v17 }
 0x12b   :  { %1092 = vadd.xlane.f32.xlu0 %v1091_v50  ;;  %v508_v25 = vpop.xlane.xlu1 %507 }
 0x12c   :  { %v505_v3 = vpop.xlane.xlu0 %504  ;;  %v518_v26 = vadd.f32 %v508_v25, %v460_v28  ;;  %v1234_v29 = vmul.f32 %v2572_v63, %v2038_v2  ;;  %v1233_v20 = vmul.f32 %v2572_v63, %v2022_v59  ;;  %v1239_v59 = vmul.f32 %v2582_v56, %v2105_v46 }
 0x12d   :  { %v517_v27 = vadd.f32 %v505_v3, %v459_v49  ;;  %v1238_v40 = vmul.f32 %v2582_v56, %v2068_v34 }
 0x12e   :  { %1159 = vadd.xlane.f32.xlu1 %v1158_v7 }
 0x12f   :  { %1156 = vadd.xlane.f32.xlu0 %v1155_v48  ;;  %v543_v32 = vpop.xlane.xlu1 %542  ;;  %v1247_v48 = vsel %vm1243_vm10, %v1234_v29, 0.0 }
 0x130   :  { %v540_v18 = vpop.xlane.xlu0 %539  ;;  %v579_v47 = vrot.slane %v543_v32, 1  ;;  %v1244_v32 = vsel %vm1243_vm10, %v1233_v20, 0.0 }
 0x131   :  { %v578_v38 = vrot.slane %v540_v18, 1 }
 0x132   :  { %v599_v54 = vadd.f32 %v579_v47, %v510_v11  ;;  %1174 = vadd.xlane.f32.xlu1 %v2400_v10 }
 0x133   :  { %v598_v14 = vadd.f32 %v578_v38, %v509_v12  ;;  %1171 = vadd.xlane.f32.xlu0 %v2403_v23  ;;  %v549_v28 = vpop.xlane.xlu1 %548  ;;  %v1164_v12 = vsel %vm890_vm9, %v1148_v24, 0.0  ;;  %v1262_v38 = vsel %vm1243_vm10, %v1239_v59, 0.0 }
 0x134   :  { %v546_v49 = vpop.xlane.xlu0 %545  ;;  %v581_v36 = vrot.slane %v549_v28, 1  ;;  %v1259_v28 = vsel %vm1243_vm10, %v1238_v40, 0.0 }
 0x135   :  { %v580_v43 = vrot.slane %v546_v49, 1  ;;  %v1149_v49 = vmul.f32 %v2550_v33, %v2316_v31 }
 0x136   :  { %v601_v50 = vadd.f32 %v581_v36, %v512_v19  ;;  %1177 = vadd.xlane.f32.xlu1 %v2413_v61 }
 0x137   :  { %v600_v11 = vadd.f32 %v580_v43, %v511_v62  ;;  %1162 = vadd.xlane.f32.xlu0 %v1161_v13  ;;  %v555_v10 = vpop.xlane.xlu1 %554 }
 0x138   :  { %v552_v23 = vpop.xlane.xlu0 %551  ;;  %v583_v25 = vrot.slane %v555_v10, 1  ;;  %v1240_v10 = vmul.f32 %v2582_v56, %v2091_v41 }
 0x139   :  { %v582_v19 = vrot.slane %v552_v23, 1  ;;  %v1235_v23 = vmul.f32 %v2572_v63, %v2010_v55 }
 0x13a   :  { %v603_v62 = vadd.f32 %v583_v25, %v514_v39  ;;  %1180 = vadd.xlane.f32.xlu1 %v2421_v8 }
 0x13b   :  { %v602_v61 = vadd.f32 %v582_v19, %v513_v21  ;;  %1165 = vadd.xlane.f32.xlu0 %v1164_v12  ;;  %v561_v3 = vpop.xlane.xlu1 %560  ;;  %v1265_v19 = vsel %vm1243_vm10, %v1240_v10, 0.0 }
 0x13c   :  { %v558_v7 = vpop.xlane.xlu0 %557  ;;  %v585_v18 = vrot.slane %v561_v3, 1  ;;  %v1250_v3 = vsel %vm1243_vm10, %v1235_v23, 0.0 }
 0x13d   :  { %v584_v58 = vrot.slane %v558_v7, 1  ;;  %v1236_v7 = vmul.f32 %v2572_v63, %v2026_v60 }
 0x13e   :  { %v605_v47 = vadd.f32 %v585_v18, %v516_v53  ;;  %1248 = vadd.xlane.f32.xlu1 %v1247_v48  ;;  %v2609_v48 = vrot.slane %v2145_v15, %v2563_v17 }
 0x13f   :  { %v604_v39 = vadd.f32 %v584_v58, %v515_v16  ;;  %1245 = vadd.xlane.f32.xlu0 %v1244_v32  ;;  %v567_v8 = vpop.xlane.xlu1 %566  ;;  %v1167_v16 = vsel %vm890_vm9, %v1149_v49, 0.0  ;;  %v1253_v58 = vsel %vm1243_vm10, %v1236_v7, 0.0 }
 0x140   :  { %v564_v21 = vpop.xlane.xlu0 %563  ;;  %v587_v13 = vrot.slane %v567_v8, 1  ;;  %v1323_v8 = vmul.f32 %v2609_v48, %v2010_v55  ;;  %v1322_v15 = vmul.f32 %v2609_v48, %v2038_v2 }
 0x141   :  { %v586_v24 = vrot.slane %v564_v21, 1 }
 0x142   :  { %v607_v36 = vadd.f32 %v587_v13, %v518_v26  ;;  %1263 = vadd.xlane.f32.xlu1 %v1262_v38  ;;  %v1241_v26 = vmul.f32 %v2582_v56, %v2120_v57 }
 0x143   :  { %v606_v43 = vadd.f32 %v586_v24, %v517_v27  ;;  %1260 = vadd.xlane.f32.xlu0 %v1259_v28  ;;  %v631_v34 = vpop.xlane.xlu1 %630  ;;  %v1335_v24 = vsel %vm1243_vm10, %v1323_v8, 0.0 }
 0x144   :  { %v628_v53 = vpop.xlane.xlu0 %627  ;;  %v667_v12 = vrot.slane %v631_v34, 1  ;;  %v1268_v59 = vsel %vm1243_vm10, %v1241_v26, 0.0  ;;  %v1332_v34 = vsel %vm1243_vm10, %v1322_v15, 0.0  ;;  %v1242_v26 = vmul.f32 %v2582_v56, %v2118_v52 }
 0x145   :  { %v666_v29 = vrot.slane %v628_v53, 1  ;;  %v1324_v56 = vmul.f32 %v2609_v48, %v2026_v60 }
 0x146   :  { %v687_v20 = vadd.f32 %v667_v12, %v599_v54  ;;  %1183 = vadd.xlane.f32.xlu1 %v2439_v22  ;;  %v1271_v7 = vsel %vm1243_vm10, %v1242_v26, 0.0 }
 0x147   :  { %v686_v33 = vadd.f32 %v666_v29, %v598_v14  ;;  %1168 = vadd.xlane.f32.xlu0 %v1167_v16  ;;  %v637_v27 = vpop.xlane.xlu1 %636  ;;  %v1338_v15 = vsel %vm1243_vm10, %v1324_v56, 0.0 }
 0x148   :  { %v634_v25 = vpop.xlane.xlu0 %633  ;;  %v669_v54 = vrot.slane %v637_v27, 1  ;;  %v1237_v27 = vmul.f32 %v2572_v63, %v2082_v42 }
 0x149   :  { %v668_v14 = vrot.slane %v634_v25, 1 }
 0x14a   :  { %v2611_v22 = vadd.f32 %v669_v54, %v601_v50  ;;  %1266 = vadd.xlane.f32.xlu1 %v1265_v19  ;;  %v2623_v50 = vrot.slane %v2171_v44, %v2563_v17  ;;  %v1256_v54 = vsel %vm1243_vm10, %v1237_v27, 0.0 }
 0x14b   :  { %v2613_v32 = vadd.f32 %v668_v14, %v600_v11  ;;  %1251 = vadd.xlane.f32.xlu0 %v1250_v3  ;;  %v643_v40 = vpop.xlane.xlu1 %642 }
 0x14c   :  { %v640_v18 = vpop.xlane.xlu0 %639  ;;  %v671_v11 = vrot.slane %v643_v40, 1  ;;  %v1328_v2 = vmul.f32 %v2623_v50, %v2091_v41  ;;  %v1327_v44 = vmul.f32 %v2623_v50, %v2105_v46  ;;  %v1329_v14 = vmul.f32 %v2623_v50, %v2120_v57 }
 0x14d   :  { %v670_v21 = vrot.slane %v640_v18, 1 }
 0x14e   :  { %v2625_v38 = vadd.f32 %v671_v11, %v603_v62  ;;  %1269 = vadd.xlane.f32.xlu1 %v1268_v59  ;;  %v1350_v12 = vsel %vm1243_vm10, %v1328_v2, 0.0  ;;  %v1347_v29 = vsel %vm1243_vm10, %v1327_v44, 0.0  ;;  %v1353_v8 = vsel %vm1243_vm10, %v1329_v14, 0.0 }
 0x14f   :  { %v2627_v28 = vadd.f32 %v670_v21, %v602_v61  ;;  %1254 = vadd.xlane.f32.xlu0 %v1253_v58  ;;  %v649_v49 = vpop.xlane.xlu1 %648  ;;  %v1325_v11 = vmul.f32 %v2609_v48, %v2082_v42  ;;  %v2675_v2 = vrot.slane %v2240_v9, %v2563_v17 }
 0x150   :  { %v646_v13 = vpop.xlane.xlu0 %645  ;;  %v673_v53 = vrot.slane %v649_v49, 1 }
 0x151   :  { %v672_v16 = vrot.slane %v646_v13, 1  ;;  %v1341_v13 = vsel %vm1243_vm10, %v1325_v11, 0.0  ;;  %v1417_v14 = vmul.f32 %v2675_v2, %v2118_v52 }
 0x152   :  { %v2635_v62 = vadd.f32 %v673_v53, %v605_v47  ;;  %1336 = vadd.xlane.f32.xlu1 %v1335_v24 }
 0x153   :  { %v692_v61 = vadd.f32 %v672_v16, %v604_v39  ;;  %1333 = vadd.xlane.f32.xlu0 %v1332_v34  ;;  %v655_v10 = vpop.xlane.xlu1 %654 }
 0x154   :  { %v652_v23 = vpop.xlane.xlu0 %651  ;;  %v675_v46 = vrot.slane %v655_v10, 1  ;;  %v1416_v10 = vmul.f32 %v2675_v2, %v2120_v57 }
 0x155   :  { %v674_v25 = vrot.slane %v652_v23, 1  ;;  %v1415_v23 = vmul.f32 %v2675_v2, %v2091_v41 }
 0x156   :  { %v2643_v19 = vadd.f32 %v675_v46, %v607_v36  ;;  %1351 = vadd.xlane.f32.xlu1 %v1350_v12  ;;  %v1438_v26 = vsel %vm1243_vm10, %v1416_v10, 0.0  ;;  %v1331_v46 = vmul.f32 %v2623_v50, %v2211_v4 }
 0x157   :  { %v694_v47 = vadd.f32 %v674_v25, %v606_v43  ;;  %1348 = vadd.xlane.f32.xlu0 %v1347_v29  ;;  %v719_v39 = vpop.xlane.xlu1 %718  ;;  %v1330_v43 = vmul.f32 %v2623_v50, %v2118_v52  ;;  %v1435_v27 = vsel %vm1243_vm10, %v1415_v23, 0.0  ;;  %v1326_v25 = vmul.f32 %v2609_v48, %v2198_v1 }
 0x158   :  { %v716_v3 = vpop.xlane.xlu0 %715  ;;  %v755_v63 = vrot.slane %v719_v39, 1 }
 0x159   :  { %v754_v59 = vrot.slane %v716_v3, 1 }
 0x15a   :  { %v2651_v40 = vadd.f32 %v755_v63, %v687_v20  ;;  %1272 = vadd.xlane.f32.xlu1 %v1271_v7  ;;  %v2663_v20 = vrot.slane %v2233_v37, %v2563_v17  ;;  %v1359_v7 = vsel %vm1243_vm10, %v1331_v46, 0.0 }
 0x15b   :  { %v774_v36 = vadd.f32 %v754_v59, %v686_v33  ;;  %1257 = vadd.xlane.f32.xlu0 %v1256_v54  ;;  %v2655_v18 = vpop.xlane.xlu1 %724  ;;  %v1356_v33 = vsel %vm1243_vm10, %v1330_v43, 0.0  ;;  %v1344_v54 = vsel %vm1243_vm10, %v1326_v25, 0.0 }
 0x15c   :  { %v722_v58 = vpop.xlane.xlu0 %721  ;;  %v1411_v24 = vmul.f32 %v2663_v20, %v2026_v60  ;;  %v1410_v34 = vmul.f32 %v2663_v20, %v2010_v55  ;;  %v1412_v50 = vmul.f32 %v2663_v20, %v2082_v42  ;;  %v1413_v11 = vmul.f32 %v2663_v20, %v2198_v1 }
 0x15d   :  { %v756_v56 = vrot.slane %v722_v58, 1  ;;  %v2713_v58 = vrot.slane %v2286_v30, %v2563_v17 }
 0x15e   :  { %1354 = vadd.xlane.f32.xlu1 %v1353_v8  ;;  %v1423_v53 = vsel %vm1243_vm10, %v1411_v24, 0.0  ;;  %v1420_v16 = vsel %vm1243_vm10, %v1410_v34, 0.0  ;;  %v1441_v8 = vsel %vm1243_vm10, %v1417_v14, 0.0 }
 0x15f   :  { %1339 = vadd.xlane.f32.xlu0 %v1338_v15  ;;  %v2666_v21 = vpop.xlane.xlu1 %730  ;;  %v1426_v15 = vsel %vm1243_vm10, %v1412_v50, 0.0  ;;  %v1499_v10 = vmul.f32 %v2713_v58, %v2082_v42  ;;  %v1498_v30 = vmul.f32 %v2713_v58, %v2026_v60  ;;  %v757_v50 = vrot.slane %v2655_v18, 1 }
 0x160   :  { %v728_v49 = vpop.xlane.xlu0 %727 }
 0x161   :  { %v1508_v42 = vsel %vm1243_vm10, %v1498_v30, 0.0 }
 0x162   :  { %1357 = vadd.xlane.f32.xlu1 %v1356_v33  ;;  %v758_v33 = vrot.slane %v728_v49, 1 }
 0x163   :  { %1342 = vadd.xlane.f32.xlu0 %v1341_v13  ;;  %v2677_v37 = vpop.xlane.xlu1 %736 }
 0x164   :  { %v734_v44 = vpop.xlane.xlu0 %733  ;;  %v778_v49 = vadd.f32 %v758_v33, %v2627_v28  ;;  %v761_v30 = vrot.slane %v2677_v37, 1 }
 0x165   :  { %v760_v55 = vrot.slane %v734_v44, 1 }
 0x166   :  { %1424 = vadd.xlane.f32.xlu1 %v1423_v53 }
 0x167   :  { %v780_v12 = vadd.f32 %v760_v55, %v692_v61  ;;  %1421 = vadd.xlane.f32.xlu0 %v1420_v16  ;;  %v2685_v9 = vpop.xlane.xlu1 %742  ;;  %v1429_v16 = vsel %vm1243_vm10, %v1413_v11, 0.0  ;;  %v777_v11 = vadd.f32 %v757_v50, %v2611_v22 }
 0x168   :  { %v740_v29 = vpop.xlane.xlu0 %739 }
 0x169   :  { %v762_v39 = vrot.slane %v740_v29, 1 }
 0x16a   :  { %1439 = vadd.xlane.f32.xlu1 %v1438_v26 }
 0x16b   :  { %v782_v3 = vadd.f32 %v762_v39, %v694_v47  ;;  %1436 = vadd.xlane.f32.xlu0 %v1435_v27  ;;  %v2693_v41 = vpop.xlane.xlu1 %806  ;;  %v1418_v47 = vmul.f32 %v2675_v2, %v2211_v4  ;;  %v1511_v27 = vsel %vm1243_vm10, %v1499_v10, 0.0 }
 0x16c   :  { %v804_v61 = vpop.xlane.xlu0 %803 }
 0x16d   :  { %v842_v63 = vrot.slane %v804_v61, 1  ;;  %v1444_v34 = vsel %vm1243_vm10, %v1418_v47, 0.0 }
 0x16e   :  { %1360 = vadd.xlane.f32.xlu1 %v1359_v7 }
 0x16f   :  { %v2701_v48 = vadd.f32 %v842_v63, %v774_v36  ;;  %1345 = vadd.xlane.f32.xlu0 %v1344_v54  ;;  %v2705_v59 = vpop.xlane.xlu1 %812  ;;  %v776_v36 = vadd.f32 %v756_v56, %v2613_v32  ;;  %v2728_v32 = vrot.slane %v2305_v51, %v2563_v17  ;;  %v763_v17 = vrot.slane %v2685_v9, 1 }
 0x170   :  { %v810_v43 = vpop.xlane.xlu0 %809  ;;  %v1419_v54 = vmul.f32 %v2675_v2, %v2279_v6  ;;  %v843_v9 = vrot.slane %v2693_v41, 1  ;;  %v1500_v41 = vmul.f32 %v2713_v58, %v2198_v1 }
 0x171   :  { %v844_v13 = vrot.slane %v810_v43, 1  ;;  %v1504_v60 = vmul.f32 %v2728_v32, %v2118_v52  ;;  %v1503_v51 = vmul.f32 %v2728_v32, %v2120_v57  ;;  %v1414_v52 = vmul.f32 %v2663_v20, %v2262_v35 }
 0x172   :  { %1442 = vadd.xlane.f32.xlu1 %v1441_v8  ;;  %v783_v57 = vadd.f32 %v763_v17, %v2643_v19  ;;  %v1447_v2 = vsel %vm1243_vm10, %v1419_v54, 0.0  ;;  %v1505_v19 = vmul.f32 %v2728_v32, %v2211_v4  ;;  %v863_v18 = vadd.f32 %v843_v9, %v2651_v40 }
 0x173   :  { %v2716_v24 = vadd.f32 %v844_v13, %v776_v36  ;;  %1427 = vadd.xlane.f32.xlu0 %v1426_v15  ;;  %v2719_v44 = vpop.xlane.xlu1 %818  ;;  %v1526_v61 = vsel %vm1243_vm10, %v1504_v60, 0.0  ;;  %v1523_v7 = vsel %vm1243_vm10, %v1503_v51, 0.0  ;;  %v1432_v20 = vsel %vm1243_vm10, %v1414_v52, 0.0 }
 0x174   :  { %v816_v53 = vpop.xlane.xlu0 %815  ;;  %v845_v8 = vrot.slane %v2705_v59, 1  ;;  %v759_v36 = vrot.slane %v2666_v21, 1  ;;  %v1514_v1 = vsel %vm1243_vm10, %v1500_v41, 0.0  ;;  %v1506_v40 = vmul.f32 %v2728_v32, %v2279_v6 }
 0x175   :  { %v846_v23 = vrot.slane %v816_v53, 1  ;;  %v1529_v53 = vsel %vm1243_vm10, %v1505_v19, 0.0  ;;  %v1501_v59 = vmul.f32 %v2713_v58, %v2262_v35  ;;  %v847_v21 = vrot.slane %v2719_v44, 1 }
 0x176   :  { %1445 = vadd.xlane.f32.xlu1 %v1444_v34  ;;  %v865_v22 = vadd.f32 %v845_v8, %v777_v11  ;;  %v1532_v6 = vsel %vm1243_vm10, %v1506_v40, 0.0  ;;  %v1507_v44 = vmul.f32 %v2728_v32, %v2336_v45  ;;  %v1855_v32 = vmov 0  }
 0x177   :  { %v2731_v55 = vadd.f32 %v846_v23, %v778_v49  ;;  %1430 = vadd.xlane.f32.xlu0 %v1429_v16  ;;  %v2733_v29 = vpop.xlane.xlu1 %824  ;;  %v1517_v35 = vsel %vm1243_vm10, %v1501_v59, 0.0  ;;  %1705 = vset.pattern.permute.xlu1 %v1855_v32 }
 0x178   :  { %v822_v26 = vpop.xlane.xlu0 %821  ;;  %v849_v37 = vrot.slane %v2733_v29, 1  ;;  %1704 = vset.pattern.permute.xlu0 %v1855_v32 }
 0x179   :  { %v848_v28 = vrot.slane %v822_v26, 1 }
 0x17a   :  { %1512 = vadd.xlane.f32.xlu1 %v1511_v27 }
 0x17b   :  { %v2742_v46 = vadd.f32 %v848_v28, %v780_v12  ;;  %1509 = vadd.xlane.f32.xlu0 %v1508_v42  ;;  %v831_v25 = vpop.xlane.xlu1 %830  ;;  %v1502_v42 = vmul.f32 %v2713_v58, %v2316_v31 }
 0x17c   :  { %v828_v39 = vpop.xlane.xlu0 %827  ;;  %v851_v12 = vrot.slane %v831_v25, 1 }
 0x17d   :  { %v850_v14 = vrot.slane %v828_v39, 1  ;;  %v1520_v45 = vsel %vm1243_vm10, %v1502_v42, 0.0 }
 0x17e   :  { %v2753_v56 = vadd.f32 %v851_v12, %v783_v57  ;;  %1527 = vadd.xlane.f32.xlu1 %v1526_v61  ;;  %v1535_v61 = vsel %vm1243_vm10, %v1507_v44, 0.0 }
 0x17f   :  { %v2755_v63 = vadd.f32 %v850_v14, %v782_v3  ;;  %1524 = vadd.xlane.f32.xlu0 %v1523_v7  ;;  %v896_v47 = vpop.xlane.xlu1 %895 }
 0x180   :  { %v893_v43 = vpop.xlane.xlu0 %892  ;;  %v932_v3 = vrot.slane %v896_v47, 2 }
 0x181   :  { %v931_v15 = vrot.slane %v893_v43, 2 }
 0x182   :  { %v952_v33 = vadd.f32 %v932_v3, %v863_v18  ;;  %1448 = vadd.xlane.f32.xlu1 %v1447_v2 }
 0x183   :  { %v951_v13 = vadd.f32 %v931_v15, %v2701_v48  ;;  %1433 = vadd.xlane.f32.xlu0 %v1432_v20  ;;  %v902_v34 = vpop.xlane.xlu1 %901  ;;  %v779_v48 = vadd.f32 %v759_v36, %v2625_v38 }
 0x184   :  { %v899_v4 = vpop.xlane.xlu0 %898  ;;  %v934_v16 = vrot.slane %v902_v34, 2 }
 0x185   :  { %v933_v10 = vrot.slane %v899_v4, 2  ;;  %v867_v38 = vadd.f32 %v847_v21, %v779_v48 }
 0x186   :  { %v954_v49 = vadd.f32 %v934_v16, %v865_v22  ;;  %1530 = vadd.xlane.f32.xlu1 %v1529_v53 }
 0x187   :  { %v953_v23 = vadd.f32 %v933_v10, %v2716_v24  ;;  %1515 = vadd.xlane.f32.xlu0 %v1514_v1  ;;  %v908_v26 = vpop.xlane.xlu1 %907  ;;  %v781_v24 = vadd.f32 %v761_v30, %v2635_v62 }
 0x188   :  { %v905_v27 = vpop.xlane.xlu0 %904  ;;  %v936_v60 = vrot.slane %v908_v26, 2 }
 0x189   :  { %v935_v51 = vrot.slane %v905_v27, 2  ;;  %v869_v31 = vadd.f32 %v849_v37, %v781_v24 }
 0x18a   :  { %v956_v17 = vadd.f32 %v936_v60, %v867_v38  ;;  %1533 = vadd.xlane.f32.xlu1 %v1532_v6 }
 0x18b   :  { %v955_v28 = vadd.f32 %v935_v51, %v2731_v55  ;;  %1518 = vadd.xlane.f32.xlu0 %v1517_v35  ;;  %v914_v25 = vpop.xlane.xlu1 %913 }
 0x18c   :  { %v911_v39 = vpop.xlane.xlu0 %910  ;;  %v938_v58 = vrot.slane %v914_v25, 2 }
 0x18d   :  { %v937_v29 = vrot.slane %v911_v39, 2 }
 0x18e   :  { %v958_v7 = vadd.f32 %v938_v58, %v869_v31  ;;  %1536 = vadd.xlane.f32.xlu1 %v1535_v61 }
 0x18f   :  { %v957_v62 = vadd.f32 %v937_v29, %v2742_v46  ;;  %1521 = vadd.xlane.f32.xlu0 %v1520_v45  ;;  %v920_v55 = vpop.xlane.xlu1 %919 }
 0x190   :  { %v917_v54 = vpop.xlane.xlu0 %916  ;;  %v940_v52 = vrot.slane %v920_v55, 2 }
 0x191   :  { %v939_v57 = vrot.slane %v917_v54, 2 }
 0x192   :  { %v960_v9 = vadd.f32 %v940_v52, %v2753_v56 }
 0x193   :  { %v959_v12 = vadd.f32 %v939_v57, %v2755_v63  ;;  %v984_v14 = vpop.xlane.xlu1 %983 }
 0x194   :  { %v981_v50 = vpop.xlane.xlu0 %980  ;;  %v1020_v47 = vrot.slane %v984_v14, 2 }
 0x195   :  { %v1019_v43 = vrot.slane %v981_v50, 2 }
 0x196   :  { %v1040_v2 = vadd.f32 %v1020_v47, %v952_v33 }
 0x197   :  { %v1039_v20 = vadd.f32 %v1019_v43, %v951_v13  ;;  %v990_v19 = vpop.xlane.xlu1 %989 }
 0x198   :  { %v987_v41 = vpop.xlane.xlu0 %986  ;;  %v1022_v18 = vrot.slane %v990_v19, 2 }
 0x199   :  { %v1021_v46 = vrot.slane %v987_v41, 2 }
 0x19a   :  { %v1042_v8 = vadd.f32 %v1022_v18, %v954_v49 }
 0x19b   :  { %v1041_v3 = vadd.f32 %v1021_v46, %v953_v23  ;;  %v996_v15 = vpop.xlane.xlu1 %995 }
 0x19c   :  { %v993_v11 = vpop.xlane.xlu0 %992  ;;  %v1024_v36 = vrot.slane %v996_v15, 2 }
 0x19d   :  { %v1023_v34 = vrot.slane %v993_v11, 2 }
 0x19e   :  { %v1044_v4 = vadd.f32 %v1024_v36, %v956_v17 }
 0x19f   :  { %v1043_v56 = vadd.f32 %v1023_v34, %v955_v28  ;;  %v1002_v53 = vpop.xlane.xlu1 %1001 }
 0x1a0   :  { %v999_v63 = vpop.xlane.xlu0 %998  ;;  %v1026_v1 = vrot.slane %v1002_v53, 2 }
 0x1a1   :  { %v1025_v40 = vrot.slane %v999_v63, 2 }
 0x1a2   :  { %v1046_v59 = vadd.f32 %v1026_v1, %v958_v7 }
 0x1a3   :  { %v1045_v22 = vadd.f32 %v1025_v40, %v957_v62  ;;  %v1008_v33 = vpop.xlane.xlu1 %1007 }
 0x1a4   :  { %v1005_v13 = vpop.xlane.xlu0 %1004  ;;  %v1028_v21 = vrot.slane %v1008_v33, 2 }
 0x1a5   :  { %v1027_v16 = vrot.slane %v1005_v13, 2 }
 0x1a6   :  { %v1048_v10 = vadd.f32 %v1028_v21, %v960_v9 }
 0x1a7   :  { %v1047_v48 = vadd.f32 %v1027_v16, %v959_v12  ;;  %v1072_v30 = vpop.xlane.xlu1 %1071 }
 0x1a8   :  { %v1069_v49 = vpop.xlane.xlu0 %1068  ;;  %v1108_v23 = vrot.slane %v1072_v30, 2 }
 0x1a9   :  { %v1107_v26 = vrot.slane %v1069_v49, 2 }
 0x1aa   :  { %v1128_v27 = vadd.f32 %v1108_v23, %v1040_v2 }
 0x1ab   :  { %v1127_v6 = vadd.f32 %v1107_v26, %v1039_v20  ;;  %v1078_v35 = vpop.xlane.xlu1 %1077 }
 0x1ac   :  { %v1075_v44 = vpop.xlane.xlu0 %1074  ;;  %v1110_v42 = vrot.slane %v1078_v35, 2 }
 0x1ad   :  { %v1109_v38 = vrot.slane %v1075_v44, 2 }
 0x1ae   :  { %v1130_v37 = vadd.f32 %v1110_v42, %v1042_v8 }
 0x1af   :  { %v1129_v60 = vadd.f32 %v1109_v38, %v1041_v3  ;;  %v1084_v51 = vpop.xlane.xlu1 %1083 }
 0x1b0   :  { %v1081_v24 = vpop.xlane.xlu0 %1080  ;;  %v1112_v17 = vrot.slane %v1084_v51, 2 }
 0x1b1   :  { %v1111_v28 = vrot.slane %v1081_v24, 2 }
 0x1b2   :  { %v1132_v25 = vadd.f32 %v1112_v17, %v1044_v4 }
 0x1b3   :  { %v1131_v39 = vadd.f32 %v1111_v28, %v1043_v56  ;;  %v1090_v61 = vpop.xlane.xlu1 %1089 }
 0x1b4   :  { %v1087_v45 = vpop.xlane.xlu0 %1086  ;;  %v1114_v32 = vrot.slane %v1090_v61, 2 }
 0x1b5   :  { %v1113_v31 = vrot.slane %v1087_v45, 2 }
 0x1b6   :  { %v1134_v58 = vadd.f32 %v1114_v32, %v1046_v59 }
 0x1b7   :  { %v1133_v29 = vadd.f32 %v1113_v31, %v1045_v22  ;;  %v1096_v7 = vpop.xlane.xlu1 %1095 }
 0x1b8   :  { %v1093_v62 = vpop.xlane.xlu0 %1092  ;;  %v1116_v55 = vrot.slane %v1096_v7, 2 }
 0x1b9   :  { %v1115_v54 = vrot.slane %v1093_v62, 2 }
 0x1ba   :  { %v1136_v52 = vadd.f32 %v1116_v55, %v1048_v10 }
 0x1bb   :  { %v1135_v57 = vadd.f32 %v1115_v54, %v1047_v48  ;;  %v1160_v9 = vpop.xlane.xlu1 %1159 }
 0x1bc   :  { %v1157_v12 = vpop.xlane.xlu0 %1156  ;;  %v1196_v14 = vrot.slane %v1160_v9, 2 }
 0x1bd   :  { %v1195_v50 = vrot.slane %v1157_v12, 2 }
 0x1be   :  { %v1216_v47 = vadd.f32 %v1196_v14, %v1128_v27 }
 0x1bf   :  { %v1215_v43 = vadd.f32 %v1195_v50, %v1127_v6  ;;  %v1175_v2 = vpop.xlane.xlu1 %1174 }
 0x1c0   :  { %v1172_v20 = vpop.xlane.xlu0 %1171  ;;  %v1201_v19 = vrot.slane %v1175_v2, 2 }
 0x1c1   :  { %v1200_v41 = vrot.slane %v1172_v20, 2 }
 0x1c2   :  { %v2792_v18 = vadd.f32 %v1201_v19, %v1133_v29 }
 0x1c3   :  { %v1220_v46 = vadd.f32 %v1200_v41, %v1132_v25  ;;  %v1178_v8 = vpop.xlane.xlu1 %1177 }
 0x1c4   :  { %v1163_v3 = vpop.xlane.xlu0 %1162  ;;  %v1202_v15 = vrot.slane %v1178_v8, 2 }
 0x1c5   :  { %v1197_v11 = vrot.slane %v1163_v3, 2 }
 0x1c6   :  { %v2794_v36 = vadd.f32 %v1202_v15, %v1134_v58 }
 0x1c7   :  { %v2796_v34 = vadd.f32 %v1197_v11, %v1129_v60  ;;  %v1181_v4 = vpop.xlane.xlu1 %1180 }
 0x1c8   :  { %v1166_v56 = vpop.xlane.xlu0 %1165  ;;  %v1203_v53 = vrot.slane %v1181_v4, 2 }
 0x1c9   :  { %v1198_v63 = vrot.slane %v1166_v56, 2 }
 0x1ca   :  { %v2798_v1 = vadd.f32 %v1203_v53, %v1135_v57 }
 0x1cb   :  { %v2800_v40 = vadd.f32 %v1198_v63, %v1130_v37  ;;  %v1249_v59 = vpop.xlane.xlu1 %1248 }
 0x1cc   :  { %v1246_v22 = vpop.xlane.xlu0 %1245  ;;  %v1285_v58 = vrot.slane %v1249_v59, 3 }
 0x1cd   :  { %v1284_v62 = vrot.slane %v1246_v22, 3 }
 0x1cf   :  { %v1264_v33 = vpop.xlane.xlu1 %1263  ;;  %v1304_v50 = vadd.f32 %v1284_v62, %v1215_v43 }
 0x1d0   :  { %v1261_v13 = vpop.xlane.xlu0 %1260  ;;  %v1290_v8 = vrot.slane %v1264_v33, 3 }
 0x1d1   :  { %v1289_v57 = vrot.slane %v1261_v13, 3 }
 0x1d3   :  { %v1184_v21 = vpop.xlane.xlu1 %1183  ;;  %v1309_v3 = vadd.f32 %v1289_v57, %v1220_v46 }
 0x1d4   :  { %v1169_v16 = vpop.xlane.xlu0 %1168  ;;  %v1204_v10 = vrot.slane %v1184_v21, 2 }
 0x1d5   :  { %v1199_v48 = vrot.slane %v1169_v16, 2  ;;  %v1310_v16 = vadd.f32 %v1290_v8, %v2792_v18 }
 0x1d6   :  { %v2802_v30 = vadd.f32 %v1204_v10, %v1136_v52  ;;  %v1305_v52 = vadd.f32 %v1285_v58, %v1216_v47 }
 0x1d7   :  { %v2804_v49 = vadd.f32 %v1199_v48, %v1131_v39  ;;  %v2806_v23 = vpop.xlane.xlu1 %1266 }
 0x1d8   :  { %v2808_v26 = vpop.xlane.xlu0 %1251 }
 0x1d9   :  { %v1286_v48 = vrot.slane %v2808_v26, 3 }
 0x1db   :  { %v2810_v27 = vpop.xlane.xlu1 %1269  ;;  %v1306_v62 = vadd.f32 %v1286_v48, %v2796_v34 }
 0x1dc   :  { %v2812_v6 = vpop.xlane.xlu0 %1254 }
 0x1dd   :  { %v1287_v57 = vrot.slane %v2812_v6, 3 }
 0x1df   :  { %v1337_v35 = vpop.xlane.xlu1 %1336  ;;  %v1307_v6 = vadd.f32 %v1287_v57, %v2800_v40 }
 0x1e0   :  { %v1334_v44 = vpop.xlane.xlu0 %1333  ;;  %v1373_v55 = vrot.slane %v1337_v35, 3 }
 0x1e1   :  { %v1372_v54 = vrot.slane %v1334_v44, 3 }
 0x1e2   :  { %v1393_v20 = vadd.f32 %v1373_v55, %v1305_v52 }
 0x1e3   :  { %v1352_v42 = vpop.xlane.xlu1 %1351  ;;  %v1392_v19 = vadd.f32 %v1372_v54, %v1304_v50 }
 0x1e4   :  { %v1349_v38 = vpop.xlane.xlu0 %1348  ;;  %v1378_v59 = vrot.slane %v1352_v42, 3  ;;  %v1291_v42 = vrot.slane %v2806_v23, 3 }
 0x1e5   :  { %v1377_v41 = vrot.slane %v1349_v38, 3 }
 0x1e6   :  { %v1398_v44 = vadd.f32 %v1378_v59, %v1310_v16  ;;  %v1311_v52 = vadd.f32 %v1291_v42, %v2794_v36  ;;  %v1292_v36 = vrot.slane %v2810_v27, 3 }
 0x1e7   :  { %v2814_v37 = vpop.xlane.xlu1 %1272  ;;  %v1397_v22 = vadd.f32 %v1377_v41, %v1309_v3 }
 0x1e8   :  { %v2816_v60 = vpop.xlane.xlu0 %1257  ;;  %v1293_v50 = vrot.slane %v2814_v37, 3 }
 0x1e9   :  { %v1288_v27 = vrot.slane %v2816_v60, 3 }
 0x1ea   :  { %v1313_v37 = vadd.f32 %v1293_v50, %v2802_v30 }
 0x1eb   :  { %v2818_v51 = vpop.xlane.xlu1 %1354 }
 0x1ec   :  { %v1340_v24 = vpop.xlane.xlu0 %1339  ;;  %v1379_v26 = vrot.slane %v2818_v51, 3 }
 0x1ed   :  { %v1374_v38 = vrot.slane %v1340_v24, 3 }
 0x1ee   :  { %v1399_v34 = vadd.f32 %v1379_v26, %v1311_v52 }
 0x1ef   :  { %v2820_v17 = vpop.xlane.xlu1 %1357 }
 0x1f0   :  { %v2822_v28 = vpop.xlane.xlu0 %1342 }
 0x1f3   :  { %v1425_v25 = vpop.xlane.xlu1 %1424 }
 0x1f4   :  { %v1422_v39 = vpop.xlane.xlu0 %1421  ;;  %v1461_v9 = vrot.slane %v1425_v25, 3 }
 0x1f5   :  { %v1460_v2 = vrot.slane %v1422_v39, 3 }
 0x1f6   :  { %v1481_v15 = vadd.f32 %v1461_v9, %v1393_v20 }
 0x1f7   :  { %v1440_v61 = vpop.xlane.xlu1 %1439  ;;  %v1480_v56 = vadd.f32 %v1460_v2, %v1392_v19 }
 0x1f8   :  { %v1437_v45 = vpop.xlane.xlu0 %1436  ;;  %v1466_v35 = vrot.slane %v1440_v61, 3  ;;  %v1394_v61 = vadd.f32 %v1374_v38, %v1306_v62 }
 0x1f9   :  { %v1465_v53 = vrot.slane %v1437_v45, 3 }
 0x1fa   :  { %v1486_v18 = vadd.f32 %v1466_v35, %v1398_v44 }
 0x1fb   :  { %v2824_v32 = vpop.xlane.xlu1 %1360  ;;  %v1485_v33 = vadd.f32 %v1465_v53, %v1397_v22 }
 0x1fc   :  { %v2826_v31 = vpop.xlane.xlu0 %1345  ;;  %v1381_v51 = vrot.slane %v2824_v32, 3 }
 0x1ff   :  { %v2828_v29 = vpop.xlane.xlu1 %1442 }
 0x200   :  { %v1428_v7 = vpop.xlane.xlu0 %1427  ;;  %v1467_v23 = vrot.slane %v2828_v29, 3 }
 0x201   :  { %v1462_v55 = vrot.slane %v1428_v7, 3  ;;  %v1375_v7 = vrot.slane %v2822_v28, 3 }
 0x203   :  { %v2830_v12 = vpop.xlane.xlu1 %1445  ;;  %v1482_v2 = vadd.f32 %v1462_v55, %v1394_v61  ;;  %v1395_v28 = vadd.f32 %v1375_v7, %v1307_v6 }
 0x204   :  { %v2832_v14 = vpop.xlane.xlu0 %1430 }
 0x205   :  { %v1463_v29 = vrot.slane %v2832_v14, 3 }
 0x207   :  { %v1513_v11 = vpop.xlane.xlu1 %1512  ;;  %v1483_v59 = vadd.f32 %v1463_v29, %v1395_v28 }
 0x208   :  { %v1510_v4 = vpop.xlane.xlu0 %1509  ;;  %v1549_v63 = vrot.slane %v1513_v11, 3 }
 0x209   :  { %v1548_v47 = vrot.slane %v1510_v4, 3  ;;  %v1380_v4 = vrot.slane %v2820_v17, 3 }
 0x20a   :  { %v1569_v13 = vadd.f32 %v1549_v63, %v1481_v15  ;;  %v1487_v15 = vadd.f32 %v1467_v23, %v1399_v34  ;;  %v1312_v63 = vadd.f32 %v1292_v36, %v2798_v1 }
 0x20b   :  { %v1568_v21 = vadd.f32 %v1548_v47, %v1480_v56  ;;  %v1528_v43 = vpop.xlane.xlu1 %1527  ;;  %v1401_v56 = vadd.f32 %v1381_v51, %v1313_v37  ;;  %v1468_v47 = vrot.slane %v2830_v12, 3 }
 0x20c   :  { %v1525_v10 = vpop.xlane.xlu0 %1524  ;;  %1592 = vperm.xlu1 %1705, %v1569_v13   ;;  %v1554_v25 = vrot.slane %v1528_v43, 3  ;;  %v1400_v14 = vadd.f32 %v1380_v4, %v1312_v63  ;;  %v1376_v13 = vrot.slane %v2826_v31, 3 }
 0x20d   :  { %v1553_v46 = vrot.slane %v1525_v10, 3  ;;  %1589 = vperm.xlu0 %1704, %v1568_v21   ;;  %v1308_v10 = vadd.f32 %v1288_v27, %v2804_v49 }
 0x20e   :  { %v1574_v54 = vadd.f32 %v1554_v25, %v1486_v18  ;;  %v1488_v48 = vadd.f32 %v1468_v47, %v1400_v14 }
 0x20f   :  { %v1573_v39 = vadd.f32 %v1553_v46, %v1485_v33  ;;  %v1449_v45 = vpop.xlane.xlu1 %1448  ;;  %v1396_v60 = vadd.f32 %v1376_v13, %v1308_v10 }
 0x210   :  { %v1434_v58 = vpop.xlane.xlu0 %1433  ;;  %v1469_v11 = vrot.slane %v1449_v45, 3 }
 0x211   :  { %1604 = vperm.xlu1 %1705, %v1573_v39   ;;  %v1464_v1 = vrot.slane %v1434_v58, 3  ;;  %v1619_v39 = vand.u32 127, %v273_v0 }
 0x212   :  { %v1489_v30 = vadd.f32 %v1469_v11, %v1401_v56 }
 0x213   :  { %v1531_v24 = vpop.xlane.xlu1 %1530  ;;  %v1484_v33 = vadd.f32 %v1464_v1, %v1396_v60  ;;  %v1622_v49 = vsub.s32 %v1619_v39, %v1921_v5 }
 0x214   :  { %v1516_v9 = vpop.xlane.xlu0 %1515  ;;  %v1555_v19 = vrot.slane %v1531_v24, 3 }
 0x215   :  { %v1550_v20 = vrot.slane %v1516_v9, 3  ;;  %1607 = vperm.xlu1 %1705, %v1574_v54  }
 0x216   :  { %v1575_v32 = vadd.f32 %v1555_v19, %v1487_v15 }
 0x217   :  { %v1570_v41 = vadd.f32 %v1550_v20, %v1482_v2  ;;  %v1534_v8 = vpop.xlane.xlu1 %1533 }
 0x218   :  { %v1519_v3 = vpop.xlane.xlu0 %1518  ;;  %v1556_v21 = vrot.slane %v1534_v8, 3 }
 0x219   :  { %1595 = vperm.xlu1 %1705, %v1570_v41   ;;  %v1551_v53 = vrot.slane %v1519_v3, 3 }
 0x21a   :  { %v1576_v35 = vadd.f32 %v1556_v21, %v1488_v48 }
 0x21b   :  { %v1537_v40 = vpop.xlane.xlu1 %1536  ;;  %v1571_v17 = vadd.f32 %v1551_v53, %v1483_v59 }
 0x21c   :  { %v1557_v22 = vrot.slane %v1537_v40, 3  ;;  %v1522_v43 = vpop.xlane.xlu0 %1521 }
 0x21d   :  { %1610 = vperm.xlu1 %1705, %v1575_v32   ;;  %v1552_v12 = vrot.slane %v1522_v43, 3 }
 0x21e   :  { %v1577_v16 = vadd.f32 %v1557_v22, %v1489_v30 }
 0x21f   :  { %v1572_v46 = vadd.f32 %v1552_v12, %v1484_v33 }
 0x220   :  { %1616 = vperm.xlu0 %1704, %v1577_v16  }
 0x221   :  { %1598 = vperm.xlu1 %1705, %v1571_v17  }
 0x225   :  { %1613 = vperm.xlu1 %1705, %v1576_v35  }
 0x229   :  { %1601 = vperm.xlu1 %1705, %v1572_v46  }
 0x28b   :  { %v1593_v44 = vpop.permute.xlu1 %1592 }
 0x28c   :  { %v1590_v45 = vpop.permute.xlu0 %1589  ;;  %v1627_v61 = vrot.slane %v1593_v44, %v1622_v49 }
 0x28d   :  { %v1623_v54 = vrot.slane %v1590_v45, %v1622_v49 }
 0x28f   :  { %v1661_v2 = vsel %vm1660_vm11, %v1627_v61, %v1623_v54 }
 0x290   :  { %v1605_v38 = vpop.permute.xlu1 %1604 }
 0x291   :  { %v1643_v55 = vrot.slane %v1605_v38, %v1622_v49 }
 0x294   :  { %v1608_v31 = vpop.permute.xlu1 %1607 }
 0x295   :  { %v1647_v62 = vrot.slane %v1608_v31, %v1622_v49 }
 0x297   :  { %v1668_v57 = vsel %vm1660_vm11, %v1647_v62, %v1643_v55 }
 0x298   :  { %v1596_v25 = vpop.permute.xlu1 %1595 }
 0x299   :  { %v1631_v24 = vrot.slane %v1596_v25, %v1622_v49 }
 0x29b   :  { %v1663_v7 = vsel %vm1662_vm12, %v1631_v24, %v1661_v2 }
 0x29c   :  { %v1611_v42 = vpop.permute.xlu1 %1610 }
 0x29d   :  { %v1651_v18 = vrot.slane %v1611_v42, %v1622_v49 }
 0x29f   :  { %v1617_v26 = vpop.permute.xlu0 %1616  ;;  %v1669_v0 = vsel %vm1662_vm12, %v1651_v18, %v1668_v57 }
 0x2a0   :  { %v1599_v58 = vpop.permute.xlu1 %1598  ;;  %v1659_v50 = vrot.slane %v1617_v26, %v1622_v49 }
 0x2a1   :  { %v1635_v5 = vrot.slane %v1599_v58, %v1622_v49 }
 0x2a3   :  { %v1665_v19 = vsel %vm1664_vm13, %v1635_v5, %v1663_v7 }
 0x2a4   :  { %v1614_v52 = vpop.permute.xlu1 %1613 }
 0x2a5   :  { %v1655_v9 = vrot.slane %v1614_v52, %v1622_v49 }
 0x2a7   :  { %v1670_v23 = vsel %vm1664_vm13, %v1655_v9, %v1669_v0 }
 0x2a8   :  { %v1602_v20 = vpop.permute.xlu1 %1601  ;;  %v1671_v34 = vsel %vm1666_vm14, %v1659_v50, %v1670_v23 }
 0x2a9   :  { %v1639_v51 = vrot.slane %v1602_v20, %v1622_v49  ;;  %1676 = vst.msk [vmem:[#allocation8 + $0x8] sm:$0x1f] %vm1674_vm15, %v1671_v34 }
 0x2ab   :  { %v1667_v41 = vsel %vm1666_vm14, %v1639_v51, %v1665_v19 }
 0x2ac   :  { %1675 = vst.msk [vmem:[#allocation8] sm:$0x1f] %vm1674_vm15, %v1667_v41 }
 0x2ad   :  { %1831 = shalt.err (!%p1828_p0)
}
 0x2ae   :  { %s1832_s30 = scalar_lea.hbm %s2883_s3, 256 }
 0x2af   :  { %p1833_p1 = scmp.ne.s32.totalorder %s2883_s3, %s1832_s30  ;;  %p1836_p2 = scmp.lt.u32.totalorder %s1832_s30, %s2883_s3 }
 0x2b1   :  { %p1838_p3 = pnand %p1836_p2, %p1833_p1 }
 0x2b3   :  { %1841 = shalt.err (!%p1838_p3)
}
 0x2b4   :  { %1688 = dma.vmem_to_hbm [thread:$0]  %s1683_s26, 256, %s2883_s3, [#allocation4], %s1849_s22, %s1849_s22, %s1850_s23  }
 0x2b5   :  { %1846 = dma.done.wait [#allocation4], 256  }
 0x2b6   :  { %1847 = vsyncadd [#allocation4], 4294967040 }
 0x2b7   :  { %1692 = vsyncpa [#allocation3], 1 }
 0x2b8   :  { %1693 = vsyncpa [#allocation6], 1 }
 0x2b9   :  { %1694 = vsyncpa [#allocation4], 1 }

</bundles_post_ra>
